<compile_context>
chip_gen: v7x
topology: tpu7x:2x2x1
jax: 0.10.0
libtpu: 0.0.40
codegen_flags: <defaults>
</compile_context>

<pallas_src>
import jax
import jax.numpy as jnp
from jax.experimental import pallas as pl
from jax.experimental.pallas import tpu as pltpu


def mlp_kernel(x_ref, w1_ref, b1_ref, wd_ref, bd_ref, w2_ref, b2_ref,
               out_ref, pad_ref):
    # x_ref block: (Bblk, H, W, Cin), NHWC
    Bblk, H, W, Cin = x_ref.shape
    Chid = w1_ref.shape[1]
    Cout = w2_ref.shape[1]

    xb = x_ref[...]                 # (Bblk, H, W, Cin)
    w1 = w1_ref[...]                # (Cin, Chid)  bf16  [in, out]
    b1 = b1_ref[...]                # (1, Chid)    f32
    wd = wd_ref[...]                # (3, 3, Chid) f32   depthwise taps
    bd = bd_ref[...]                # (1, Chid)    f32
    w2 = w2_ref[...]                # (Chid, Cout) bf16  [in, out]
    b2 = b2_ref[...]                # (1, Cout)    f32

    # ---- fc1: 1x1 conv == per-pixel matmul over channels (MXU, bf16 in,
    # f32 accumulation) ---------------------------------------------------
    h1 = jnp.dot(xb.reshape(Bblk * H * W, Cin).astype(jnp.bfloat16), w1,
                 preferred_element_type=jnp.float32)
    h1 = h1.reshape(Bblk, H, W, Chid) + b1          # (1,Chid) broadcasts on lanes

    # ---- dwconv: depthwise 3x3, padding 1 --------------------------------
    # Only the thin halo strips are zeroed each step; the interior is fully
    # overwritten, so no whole-scratch refill is needed.
    pad_ref[:, 0:1, :, :] = jnp.zeros((Bblk, 1, W + 2, Chid), jnp.float32)
    pad_ref[:, H + 1:H + 2, :, :] = jnp.zeros((Bblk, 1, W + 2, Chid), jnp.float32)
    pad_ref[:, 1:H + 1, 0:1, :] = jnp.zeros((Bblk, H, 1, Chid), jnp.float32)
    pad_ref[:, 1:H + 1, W + 1:W + 2, :] = jnp.zeros((Bblk, H, 1, Chid), jnp.float32)
    pad_ref[:, 1:H + 1, 1:W + 1, :] = h1

    acc = jnp.zeros((Bblk, H, W, Chid), jnp.float32) + bd
    for i in range(3):
        for j in range(3):
            acc = acc + pad_ref[:, i:i + H, j:j + W, :] * wd[i, j, :]

    # ---- GELU -------------------------------------------------------------
    # TODO(synk): exact-erf GELU (nn.GELU default) realized with the tanh
    # approximation in-kernel (|error| <= ~3e-3); erf lowering is not relied on.
    c = 0.7978845608028654  # sqrt(2/pi)
    h3 = 0.5 * acc * (1.0 + jnp.tanh(c * (acc + 0.044715 * acc * acc * acc)))

    # ---- fc2: 1x1 conv (MXU, bf16 in, f32 accumulation) -------------------
    o = jnp.dot(h3.reshape(Bblk * H * W, Chid).astype(jnp.bfloat16), w2,
                preferred_element_type=jnp.float32)
    out_ref[...] = (o.reshape(Bblk, H, W, Cout) + b2).astype(out_ref.dtype)


def mlp_forward(x, params, *, batch_block=1):
    """x: (B, H, W, Cin) NHWC float32.  Returns (B, H, W, Cout) NHWC."""
    w1, b1, wd, bd, w2, b2 = params
    B, H, W, Cin = x.shape
    Chid = w1.shape[1]
    Cout = w2.shape[1]
    assert B % batch_block == 0, "batch_block must divide B"
    nsteps = B // batch_block

    # bf16 weights for the two MXU matmuls (halves their HBM traffic).
    w1b = w1.astype(jnp.bfloat16)
    w2b = w2.astype(jnp.bfloat16)

    # Explicit VMEM budget (double-buffered in/out blocks + weights + scratch),
    # clamped well below v7x's 64 MiB physical VMEM.
    blk_bytes = batch_block * H * W * (Cin + Cout) * 4
    wt_bytes = (Cin * Chid + Chid * Cout) * 2 + (9 * Chid + 2 * Chid + Cout) * 4
    scratch_bytes = batch_block * (H + 2) * (W + 2) * Chid * 4
    vmem_budget = 2 * (blk_bytes + wt_bytes) + scratch_bytes + (4 << 20)
    vmem_budget = int(min(max(vmem_budget, 16 << 20), 48 << 20))

    return pl.pallas_call(
        mlp_kernel,
        out_shape=jax.ShapeDtypeStruct((B, H, W, Cout), x.dtype),
        grid_spec=pltpu.PrefetchScalarGridSpec(
            num_scalar_prefetch=0,
            grid=(nsteps,),
            in_specs=[
                pl.BlockSpec((batch_block, H, W, Cin), lambda b: (b, 0, 0, 0)),
                pl.BlockSpec((Cin, Chid), lambda b: (0, 0)),
                pl.BlockSpec((1, Chid), lambda b: (0, 0)),
                pl.BlockSpec((3, 3, Chid), lambda b: (0, 0, 0)),
                pl.BlockSpec((1, Chid), lambda b: (0, 0)),
                pl.BlockSpec((Chid, Cout), lambda b: (0, 0)),
                pl.BlockSpec((1, Cout), lambda b: (0, 0)),
            ],
            out_specs=pl.BlockSpec((batch_block, H, W, Cout),
                                   lambda b: (b, 0, 0, 0)),
            scratch_shapes=[
                # zero-padded image for the depthwise 3x3 (pad 1 each side)
                pltpu.VMEM((batch_block, H + 2, W + 2, Chid), jnp.float32),
            ],
        ),
        compiler_params=pltpu.CompilerParams(
            dimension_semantics=("parallel",),   # batch steps are independent
            vmem_limit_bytes=vmem_budget,
        ),
    )(x, w1b, b1, wd, bd, w2b, b2)


def reference(x, params):
    """Pure-JAX NHWC reference mirroring the PyTorch Mlp (linear=False, eval)."""
    w1, b1, wd, bd, w2, b2 = params
    Chid = w1.shape[1]
    dn = ('NHWC', 'HWIO', 'NHWC')
    h = jax.lax.conv_general_dilated(
        x, w1.reshape(1, 1, *w1.shape), (1, 1), [(0, 0), (0, 0)],
        dimension_numbers=dn) + b1.reshape(1, 1, 1, -1)
    h = jax.lax.conv_general_dilated(
        h, wd.reshape(3, 3, 1, Chid), (1, 1), [(1, 1), (1, 1)],
        dimension_numbers=dn, feature_group_count=Chid) + bd.reshape(1, 1, 1, -1)
    h = jax.nn.gelu(h, approximate=False)          # nn.GELU default (exact erf)
    h = jax.lax.conv_general_dilated(
        h, w2.reshape(1, 1, *w2.shape), (1, 1), [(0, 0), (0, 0)],
        dimension_numbers=dn) + b2.reshape(1, 1, 1, -1)
    return h


def init_params(key, cin, chid, cout):
    ks = jax.random.split(key, 6)
    s = 0.1
    w1 = s * jax.random.normal(ks[0], (cin, chid), jnp.float32)   # [in, out]
    b1 = s * jax.random.normal(ks[1], (1, chid), jnp.float32)
    wd = s * jax.random.normal(ks[2], (3, 3, chid), jnp.float32)  # depthwise taps
    bd = s * jax.random.normal(ks[3], (1, chid), jnp.float32)
    w2 = s * jax.random.normal(ks[4], (chid, cout), jnp.float32)  # [in, out]
    b2 = s * jax.random.normal(ks[5], (1, cout), jnp.float32)
    return (w1, b1, wd, bd, w2, b2)


if __name__ == "__main__":
    B, H, W = 2, 16, 16
    Cin, Chid, Cout = 8, 32, 8

    key = jax.random.PRNGKey(0)
    kx, kp = jax.random.split(key)
    x = jax.random.normal(kx, (B, H, W, Cin), jnp.float32)   # NHWC
    params = init_params(kp, Cin, Chid, Cout)

    out = jax.block_until_ready(mlp_forward(x, params, batch_block=1))
    ref = jax.block_until_ready(reference(x, params))

    assert out.shape == (B, H, W, Cout)
    # Tolerance covers bf16 MXU matmuls (f32 accumulation) and tanh-GELU approx.
    assert jnp.allclose(out, ref, rtol=2e-2, atol=2e-2), "mismatch vs reference"

    print("KERNEL_OK")
</pallas_src>

<mosaic_0001>
module attributes {stable_mosaic.version = 11 : i64} {
  func.func @mlp_kernel(%arg0: i32, %arg1: memref<1x16x16x8xf32, #tpu.memory_space<vmem>>, %arg2: memref<8x32xbf16, #tpu.memory_space<vmem>>, %arg3: memref<1x32xf32, #tpu.memory_space<vmem>>, %arg4: memref<3x3x32xf32, #tpu.memory_space<vmem>>, %arg5: memref<1x32xf32, #tpu.memory_space<vmem>>, %arg6: memref<32x8xbf16, #tpu.memory_space<vmem>>, %arg7: memref<1x8xf32, #tpu.memory_space<vmem>>, %arg8: memref<1x16x16x8xf32, #tpu.memory_space<vmem>>, %arg9: memref<1x18x18x32xf32, #tpu.memory_space<vmem>>) attributes {dimension_semantics = [#tpu.dimension_semantics<parallel>], iteration_bounds = array<i64: 2>, scalar_prefetch = 0 : i64, scratch_operands = 1 : i64, tpu.core_type = #tpu.core_type<tc>, window_params = [{transform_indices = @transform_0, window_bounds = array<i64: 1, 16, 16, 8>}, {pipeline_mode = #tpu.pipeline_mode<synchronous>, transform_indices = @transform_1, window_bounds = array<i64: 8, 32>}, {pipeline_mode = #tpu.pipeline_mode<synchronous>, transform_indices = @transform_2, window_bounds = array<i64: 1, 32>}, {pipeline_mode = #tpu.pipeline_mode<synchronous>, transform_indices = @transform_3, window_bounds = array<i64: 3, 3, 32>}, {pipeline_mode = #tpu.pipeline_mode<synchronous>, transform_indices = @transform_4, window_bounds = array<i64: 1, 32>}, {pipeline_mode = #tpu.pipeline_mode<synchronous>, transform_indices = @transform_5, window_bounds = array<i64: 32, 8>}, {pipeline_mode = #tpu.pipeline_mode<synchronous>, transform_indices = @transform_6, window_bounds = array<i64: 1, 8>}, {transform_indices = @transform_7, window_bounds = array<i64: 1, 16, 16, 8>}]} {
    %c0 = arith.constant 0 : index
    %c0_0 = arith.constant 0 : index
    %c0_1 = arith.constant 0 : index
    %c0_2 = arith.constant 0 : index
    %0 = vector.load %arg1[%c0, %c0_0, %c0_1, %c0_2] : memref<1x16x16x8xf32, #tpu.memory_space<vmem>>, vector<1x16x16x8xf32>
    %c0_3 = arith.constant 0 : index
    %c0_4 = arith.constant 0 : index
    %1 = vector.load %arg2[%c0_3, %c0_4] : memref<8x32xbf16, #tpu.memory_space<vmem>>, vector<8x32xbf16>
    %c0_5 = arith.constant 0 : index
    %c0_6 = arith.constant 0 : index
    %2 = vector.load %arg3[%c0_5, %c0_6] : memref<1x32xf32, #tpu.memory_space<vmem>>, vector<1x32xf32>
    %c0_7 = arith.constant 0 : index
    %c0_8 = arith.constant 0 : index
    %c0_9 = arith.constant 0 : index
    %3 = vector.load %arg4[%c0_7, %c0_8, %c0_9] : memref<3x3x32xf32, #tpu.memory_space<vmem>>, vector<3x3x32xf32>
    %c0_10 = arith.constant 0 : index
    %c0_11 = arith.constant 0 : index
    %4 = vector.load %arg5[%c0_10, %c0_11] : memref<1x32xf32, #tpu.memory_space<vmem>>, vector<1x32xf32>
    %c0_12 = arith.constant 0 : index
    %c0_13 = arith.constant 0 : index
    %5 = vector.load %arg6[%c0_12, %c0_13] : memref<32x8xbf16, #tpu.memory_space<vmem>>, vector<32x8xbf16>
    %c0_14 = arith.constant 0 : index
    %c0_15 = arith.constant 0 : index
    %6 = vector.load %arg7[%c0_14, %c0_15] : memref<1x8xf32, #tpu.memory_space<vmem>>, vector<1x8xf32>
    %7 = vector.shape_cast %0 : vector<1x16x16x8xf32> to vector<256x8xf32>
    %8 = arith.truncf %7 : vector<256x8xf32> to vector<256x8xbf16>
    %cst = arith.constant dense<0.000000e+00> : vector<256x32xf32>
    %9 = tpu.matmul %8, %1, %cst {dimension_numbers = #tpu.dot_dimension_numbers<[1], [0], [0], [1], [0, 0, 1, 1], [], []>} : vector<256x8xbf16>, vector<8x32xbf16>, vector<256x32xf32> -> vector<256x32xf32>
    %10 = vector.shape_cast %9 : vector<256x32xf32> to vector<1x16x16x32xf32>
    %11 = vector.shape_cast %2 : vector<1x32xf32> to vector<1x1x1x32xf32>
    %12 = vector.broadcast %11 : vector<1x1x1x32xf32> to vector<1x16x16x32xf32>
    %13 = arith.addf %10, %12 : vector<1x16x16x32xf32>
    %cst_16 = arith.constant 0.000000e+00 : f32
    %14 = vector.broadcast %cst_16 : f32 to vector<1x1x18x32xf32>
    %c0_17 = arith.constant 0 : index
    %c0_18 = arith.constant 0 : index
    %c0_19 = arith.constant 0 : index
    %c0_20 = arith.constant 0 : index
    %15 = vector.load %arg9[%c0_17, %c0_18, %c0_19, %c0_20] : memref<1x18x18x32xf32, #tpu.memory_space<vmem>>, vector<1x1x18x32xf32>
    tpu.vector_store %arg9[%c0_17, %c0_18, %c0_19, %c0_20], %14 {strides = array<i32>} : memref<1x18x18x32xf32, #tpu.memory_space<vmem>>, vector<1x1x18x32xf32>,
    %cst_21 = arith.constant 0.000000e+00 : f32
    %16 = vector.broadcast %cst_21 : f32 to vector<1x1x18x32xf32>
    %c0_22 = arith.constant 0 : index
    %c17 = arith.constant 17 : index
    %c0_23 = arith.constant 0 : index
    %c0_24 = arith.constant 0 : index
    %17 = vector.load %arg9[%c0_22, %c17, %c0_23, %c0_24] : memref<1x18x18x32xf32, #tpu.memory_space<vmem>>, vector<1x1x18x32xf32>
    tpu.vector_store %arg9[%c0_22, %c17, %c0_23, %c0_24], %16 {strides = array<i32>} : memref<1x18x18x32xf32, #tpu.memory_space<vmem>>, vector<1x1x18x32xf32>,
    %cst_25 = arith.constant 0.000000e+00 : f32
    %18 = vector.broadcast %cst_25 : f32 to vector<1x16x1x32xf32>
    %c0_26 = arith.constant 0 : index
    %c1 = arith.constant 1 : index
    %c0_27 = arith.constant 0 : index
    %c0_28 = arith.constant 0 : index
    %19 = vector.load %arg9[%c0_26, %c1, %c0_27, %c0_28] : memref<1x18x18x32xf32, #tpu.memory_space<vmem>>, vector<1x16x1x32xf32>
    tpu.vector_store %arg9[%c0_26, %c1, %c0_27, %c0_28], %18 {strides = array<i32>} : memref<1x18x18x32xf32, #tpu.memory_space<vmem>>, vector<1x16x1x32xf32>,
    %cst_29 = arith.constant 0.000000e+00 : f32
    %20 = vector.broadcast %cst_29 : f32 to vector<1x16x1x32xf32>
    %c0_30 = arith.constant 0 : index
    %c1_31 = arith.constant 1 : index
    %c17_32 = arith.constant 17 : index
    %c0_33 = arith.constant 0 : index
    %21 = vector.load %arg9[%c0_30, %c1_31, %c17_32, %c0_33] : memref<1x18x18x32xf32, #tpu.memory_space<vmem>>, vector<1x16x1x32xf32>
    tpu.vector_store %arg9[%c0_30, %c1_31, %c17_32, %c0_33], %20 {strides = array<i32>} : memref<1x18x18x32xf32, #tpu.memory_space<vmem>>, vector<1x16x1x32xf32>,
    %c0_34 = arith.constant 0 : index
    %c1_35 = arith.constant 1 : index
    %c1_36 = arith.constant 1 : index
    %c0_37 = arith.constant 0 : index
    %22 = vector.load %arg9[%c0_34, %c1_35, %c1_36, %c0_37] : memref<1x18x18x32xf32, #tpu.memory_space<vmem>>, vector<1x16x16x32xf32>
    tpu.vector_store %arg9[%c0_34, %c1_35, %c1_36, %c0_37], %13 {strides = array<i32>} : memref<1x18x18x32xf32, #tpu.memory_space<vmem>>, vector<1x16x16x32xf32>,
    %cst_38 = arith.constant 0.000000e+00 : f32
    %23 = vector.broadcast %cst_38 : f32 to vector<1x16x16x32xf32>
    %24 = vector.shape_cast %4 : vector<1x32xf32> to vector<1x1x1x32xf32>
    %25 = vector.broadcast %24 : vector<1x1x1x32xf32> to vector<1x16x16x32xf32>
    %26 = arith.addf %23, %25 : vector<1x16x16x32xf32>
    %c0_39 = arith.constant 0 : index
    %c0_40 = arith.constant 0 : index
    %c0_41 = arith.constant 0 : index
    %c0_42 = arith.constant 0 : index
    %27 = vector.load %arg9[%c0_39, %c0_40, %c0_41, %c0_42] : memref<1x18x18x32xf32, #tpu.memory_space<vmem>>, vector<1x16x16x32xf32>
    %28 = vector.extract_strided_slice %3 {offsets = [0, 0, 0], sizes = [1, 1, 32], strides = [1, 1, 1]} : vector<3x3x32xf32> to vector<1x1x32xf32>
    %29 = vector.shape_cast %28 : vector<1x1x32xf32> to vector<32xf32>
    %30 = vector.shape_cast %29 : vector<32xf32> to vector<1x1x1x32xf32>
    %31 = vector.broadcast %30 : vector<1x1x1x32xf32> to vector<1x16x16x32xf32>
    %32 = arith.mulf %27, %31 : vector<1x16x16x32xf32>
    %33 = arith.addf %26, %32 : vector<1x16x16x32xf32>
    %c0_43 = arith.constant 0 : index
    %c0_44 = arith.constant 0 : index
    %c1_45 = arith.constant 1 : index
    %c0_46 = arith.constant 0 : index
    %34 = vector.load %arg9[%c0_43, %c0_44, %c1_45, %c0_46] : memref<1x18x18x32xf32, #tpu.memory_space<vmem>>, vector<1x16x16x32xf32>
    %35 = vector.extract_strided_slice %3 {offsets = [0, 1, 0], sizes = [1, 1, 32], strides = [1, 1, 1]} : vector<3x3x32xf32> to vector<1x1x32xf32>
    %36 = vector.shape_cast %35 : vector<1x1x32xf32> to vector<32xf32>
    %37 = vector.shape_cast %36 : vector<32xf32> to vector<1x1x1x32xf32>
    %38 = vector.broadcast %37 : vector<1x1x1x32xf32> to vector<1x16x16x32xf32>
    %39 = arith.mulf %34, %38 : vector<1x16x16x32xf32>
    %40 = arith.addf %33, %39 : vector<1x16x16x32xf32>
    %c0_47 = arith.constant 0 : index
    %c0_48 = arith.constant 0 : index
    %c2 = arith.constant 2 : index
    %c0_49 = arith.constant 0 : index
    %41 = vector.load %arg9[%c0_47, %c0_48, %c2, %c0_49] : memref<1x18x18x32xf32, #tpu.memory_space<vmem>>, vector<1x16x16x32xf32>
    %42 = vector.extract_strided_slice %3 {offsets = [0, 2, 0], sizes = [1, 1, 32], strides = [1, 1, 1]} : vector<3x3x32xf32> to vector<1x1x32xf32>
    %43 = vector.shape_cast %42 : vector<1x1x32xf32> to vector<32xf32>
    %44 = vector.shape_cast %43 : vector<32xf32> to vector<1x1x1x32xf32>
    %45 = vector.broadcast %44 : vector<1x1x1x32xf32> to vector<1x16x16x32xf32>
    %46 = arith.mulf %41, %45 : vector<1x16x16x32xf32>
    %47 = arith.addf %40, %46 : vector<1x16x16x32xf32>
    %c0_50 = arith.constant 0 : index
    %c1_51 = arith.constant 1 : index
    %c0_52 = arith.constant 0 : index
    %c0_53 = arith.constant 0 : index
    %48 = vector.load %arg9[%c0_50, %c1_51, %c0_52, %c0_53] : memref<1x18x18x32xf32, #tpu.memory_space<vmem>>, vector<1x16x16x32xf32>
    %49 = vector.extract_strided_slice %3 {offsets = [1, 0, 0], sizes = [1, 1, 32], strides = [1, 1, 1]} : vector<3x3x32xf32> to vector<1x1x32xf32>
    %50 = vector.shape_cast %49 : vector<1x1x32xf32> to vector<32xf32>
    %51 = vector.shape_cast %50 : vector<32xf32> to vector<1x1x1x32xf32>
    %52 = vector.broadcast %51 : vector<1x1x1x32xf32> to vector<1x16x16x32xf32>
    %53 = arith.mulf %48, %52 : vector<1x16x16x32xf32>
    %54 = arith.addf %47, %53 : vector<1x16x16x32xf32>
    %c0_54 = arith.constant 0 : index
    %c1_55 = arith.constant 1 : index
    %c1_56 = arith.constant 1 : index
    %c0_57 = arith.constant 0 : index
    %55 = vector.load %arg9[%c0_54, %c1_55, %c1_56, %c0_57] : memref<1x18x18x32xf32, #tpu.memory_space<vmem>>, vector<1x16x16x32xf32>
    %56 = vector.extract_strided_slice %3 {offsets = [1, 1, 0], sizes = [1, 1, 32], strides = [1, 1, 1]} : vector<3x3x32xf32> to vector<1x1x32xf32>
    %57 = vector.shape_cast %56 : vector<1x1x32xf32> to vector<32xf32>
    %58 = vector.shape_cast %57 : vector<32xf32> to vector<1x1x1x32xf32>
    %59 = vector.broadcast %58 : vector<1x1x1x32xf32> to vector<1x16x16x32xf32>
    %60 = arith.mulf %55, %59 : vector<1x16x16x32xf32>
    %61 = arith.addf %54, %60 : vector<1x16x16x32xf32>
    %c0_58 = arith.constant 0 : index
    %c1_59 = arith.constant 1 : index
    %c2_60 = arith.constant 2 : index
    %c0_61 = arith.constant 0 : index
    %62 = vector.load %arg9[%c0_58, %c1_59, %c2_60, %c0_61] : memref<1x18x18x32xf32, #tpu.memory_space<vmem>>, vector<1x16x16x32xf32>
    %63 = vector.extract_strided_slice %3 {offsets = [1, 2, 0], sizes = [1, 1, 32], strides = [1, 1, 1]} : vector<3x3x32xf32> to vector<1x1x32xf32>
    %64 = vector.shape_cast %63 : vector<1x1x32xf32> to vector<32xf32>
    %65 = vector.shape_cast %64 : vector<32xf32> to vector<1x1x1x32xf32>
    %66 = vector.broadcast %65 : vector<1x1x1x32xf32> to vector<1x16x16x32xf32>
    %67 = arith.mulf %62, %66 : vector<1x16x16x32xf32>
    %68 = arith.addf %61, %67 : vector<1x16x16x32xf32>
    %c0_62 = arith.constant 0 : index
    %c2_63 = arith.constant 2 : index
    %c0_64 = arith.constant 0 : index
    %c0_65 = arith.constant 0 : index
    %69 = vector.load %arg9[%c0_62, %c2_63, %c0_64, %c0_65] : memref<1x18x18x32xf32, #tpu.memory_space<vmem>>, vector<1x16x16x32xf32>
    %70 = vector.extract_strided_slice %3 {offsets = [2, 0, 0], sizes = [1, 1, 32], strides = [1, 1, 1]} : vector<3x3x32xf32> to vector<1x1x32xf32>
    %71 = vector.shape_cast %70 : vector<1x1x32xf32> to vector<32xf32>
    %72 = vector.shape_cast %71 : vector<32xf32> to vector<1x1x1x32xf32>
    %73 = vector.broadcast %72 : vector<1x1x1x32xf32> to vector<1x16x16x32xf32>
    %74 = arith.mulf %69, %73 : vector<1x16x16x32xf32>
    %75 = arith.addf %68, %74 : vector<1x16x16x32xf32>
    %c0_66 = arith.constant 0 : index
    %c2_67 = arith.constant 2 : index
    %c1_68 = arith.constant 1 : index
    %c0_69 = arith.constant 0 : index
    %76 = vector.load %arg9[%c0_66, %c2_67, %c1_68, %c0_69] : memref<1x18x18x32xf32, #tpu.memory_space<vmem>>, vector<1x16x16x32xf32>
    %77 = vector.extract_strided_slice %3 {offsets = [2, 1, 0], sizes = [1, 1, 32], strides = [1, 1, 1]} : vector<3x3x32xf32> to vector<1x1x32xf32>
    %78 = vector.shape_cast %77 : vector<1x1x32xf32> to vector<32xf32>
    %79 = vector.shape_cast %78 : vector<32xf32> to vector<1x1x1x32xf32>
    %80 = vector.broadcast %79 : vector<1x1x1x32xf32> to vector<1x16x16x32xf32>
    %81 = arith.mulf %76, %80 : vector<1x16x16x32xf32>
    %82 = arith.addf %75, %81 : vector<1x16x16x32xf32>
    %c0_70 = arith.constant 0 : index
    %c2_71 = arith.constant 2 : index
    %c2_72 = arith.constant 2 : index
    %c0_73 = arith.constant 0 : index
    %83 = vector.load %arg9[%c0_70, %c2_71, %c2_72, %c0_73] : memref<1x18x18x32xf32, #tpu.memory_space<vmem>>, vector<1x16x16x32xf32>
    %84 = vector.extract_strided_slice %3 {offsets = [2, 2, 0], sizes = [1, 1, 32], strides = [1, 1, 1]} : vector<3x3x32xf32> to vector<1x1x32xf32>
    %85 = vector.shape_cast %84 : vector<1x1x32xf32> to vector<32xf32>
    %86 = vector.shape_cast %85 : vector<32xf32> to vector<1x1x1x32xf32>
    %87 = vector.broadcast %86 : vector<1x1x1x32xf32> to vector<1x16x16x32xf32>
    %88 = arith.mulf %83, %87 : vector<1x16x16x32xf32>
    %89 = arith.addf %82, %88 : vector<1x16x16x32xf32>
    %cst_74 = arith.constant 5.000000e-01 : f32
    %90 = vector.broadcast %cst_74 : f32 to vector<1x16x16x32xf32>
    %91 = arith.mulf %90, %89 : vector<1x16x16x32xf32>
    %cst_75 = arith.constant 4.471500e-02 : f32
    %92 = vector.broadcast %cst_75 : f32 to vector<1x16x16x32xf32>
    %93 = arith.mulf %92, %89 : vector<1x16x16x32xf32>
    %94 = arith.mulf %93, %89 : vector<1x16x16x32xf32>
    %95 = arith.mulf %94, %89 : vector<1x16x16x32xf32>
    %96 = arith.addf %89, %95 : vector<1x16x16x32xf32>
    %cst_76 = arith.constant 0.797884583 : f32
    %97 = vector.broadcast %cst_76 : f32 to vector<1x16x16x32xf32>
    %98 = arith.mulf %97, %96 : vector<1x16x16x32xf32>
    %99 = math.tanh %98 : vector<1x16x16x32xf32>
    %cst_77 = arith.constant 1.000000e+00 : f32
    %100 = vector.broadcast %cst_77 : f32 to vector<1x16x16x32xf32>
    %101 = arith.addf %100, %99 : vector<1x16x16x32xf32>
    %102 = arith.mulf %91, %101 : vector<1x16x16x32xf32>
    %103 = vector.shape_cast %102 : vector<1x16x16x32xf32> to vector<256x32xf32>
    %104 = arith.truncf %103 : vector<256x32xf32> to vector<256x32xbf16>
    %cst_78 = arith.constant dense<0.000000e+00> : vector<256x8xf32>
    %105 = tpu.matmul %104, %5, %cst_78 {dimension_numbers = #tpu.dot_dimension_numbers<[1], [0], [0], [1], [0, 0, 1, 1], [], []>} : vector<256x32xbf16>, vector<32x8xbf16>, vector<256x8xf32> -> vector<256x8xf32>
    %106 = vector.shape_cast %105 : vector<256x8xf32> to vector<1x16x16x8xf32>
    %107 = vector.shape_cast %6 : vector<1x8xf32> to vector<1x1x1x8xf32>
    %108 = vector.broadcast %107 : vector<1x1x1x8xf32> to vector<1x16x16x8xf32>
    %109 = arith.addf %106, %108 : vector<1x16x16x8xf32>
    %c0_79 = arith.constant 0 : index
    %c0_80 = arith.constant 0 : index
    %c0_81 = arith.constant 0 : index
    %c0_82 = arith.constant 0 : index
    %110 = vector.load %arg8[%c0_79, %c0_80, %c0_81, %c0_82] : memref<1x16x16x8xf32, #tpu.memory_space<vmem>>, vector<1x16x16x8xf32>
    tpu.vector_store %arg8[%c0_79, %c0_80, %c0_81, %c0_82], %109 {strides = array<i32>} : memref<1x16x16x8xf32, #tpu.memory_space<vmem>>, vector<1x16x16x8xf32>,
    return
  }
  func.func @transform_0(%arg0: i32) -> (i32, i32, i32, i32) {
    %c0_i32 = arith.constant 0 : i32
    %c0_i32_0 = arith.constant 0 : i32
    %c0_i32_1 = arith.constant 0 : i32
    %c0_i32_2 = arith.constant 0 : i32
    return %arg0, %c0_i32, %c0_i32_0, %c0_i32_1 : i32, i32, i32, i32
  }
  func.func @transform_1(%arg0: i32) -> (i32, i32) {
    %c0_i32 = arith.constant 0 : i32
    %c0_i32_0 = arith.constant 0 : i32
    %c0_i32_1 = arith.constant 0 : i32
    return %c0_i32, %c0_i32_0 : i32, i32
  }
  func.func @transform_2(%arg0: i32) -> (i32, i32) {
    %c0_i32 = arith.constant 0 : i32
    %c0_i32_0 = arith.constant 0 : i32
    %c0_i32_1 = arith.constant 0 : i32
    return %c0_i32, %c0_i32_0 : i32, i32
  }
  func.func @transform_3(%arg0: i32) -> (i32, i32, i32) {
    %c0_i32 = arith.constant 0 : i32
    %c0_i32_0 = arith.constant 0 : i32
    %c0_i32_1 = arith.constant 0 : i32
    %c0_i32_2 = arith.constant 0 : i32
    return %c0_i32, %c0_i32_0, %c0_i32_1 : i32, i32, i32
  }
  func.func @transform_4(%arg0: i32) -> (i32, i32) {
    %c0_i32 = arith.constant 0 : i32
    %c0_i32_0 = arith.constant 0 : i32
    %c0_i32_1 = arith.constant 0 : i32
    return %c0_i32, %c0_i32_0 : i32, i32
  }
  func.func @transform_5(%arg0: i32) -> (i32, i32) {
    %c0_i32 = arith.constant 0 : i32
    %c0_i32_0 = arith.constant 0 : i32
    %c0_i32_1 = arith.constant 0 : i32
    return %c0_i32, %c0_i32_0 : i32, i32
  }
  func.func @transform_6(%arg0: i32) -> (i32, i32) {
    %c0_i32 = arith.constant 0 : i32
    %c0_i32_0 = arith.constant 0 : i32
    %c0_i32_1 = arith.constant 0 : i32
    return %c0_i32, %c0_i32_0 : i32, i32
  }
  func.func @transform_7(%arg0: i32) -> (i32, i32, i32, i32) {
    %c0_i32 = arith.constant 0 : i32
    %c0_i32_0 = arith.constant 0 : i32
    %c0_i32_1 = arith.constant 0 : i32
    %c0_i32_2 = arith.constant 0 : i32
    return %arg0, %c0_i32, %c0_i32_0, %c0_i32_1 : i32, i32, i32, i32
  }
}

</mosaic_0001>

<bundles_post_ra>
// kernel: tpu_custom_call.1
= control target key start
LH: loop header
LB: loop body
LE: loop exit
PB: predicated region body
PF: predicated region fallthrough
CT: control target
= control target key end

     0   :  { %s2517_s24 = smov 0   ;;  %s3760_s0 = inlined_call_operand.vmem [shape: f32[2,16,16,8], index: 0, kind: input, shape index: {}]   ;;  %s3761_s1 = inlined_call_operand.vmem [shape: bf16[8,32], index: 1, kind: input, shape index: {}]   ;;  %s3762_s2 = inlined_call_operand.vmem [shape: f32[1,32], index: 2, kind: input, shape index: {}]   ;;  %s3763_s3 = inlined_call_operand.vmem [shape: f32[3,3,32], index: 3, kind: input, shape index: {}]   ;;  %s3764_s4 = inlined_call_operand.vmem [shape: f32[1,32], index: 4, kind: input, shape index: {}]   ;;  %s3765_s5 = inlined_call_operand.vmem [shape: bf16[32,8], index: 5, kind: input, shape index: {}]   ;;  %s3766_s6 = inlined_call_operand.vmem [shape: f32[1,8], index: 6, kind: input, shape index: {}]   ;;  %s3767_s7 = inlined_call_operand.vmem [shape: f32[2,16,16,8], index: 7, kind: output, shape index: {}]  }
   0x1 LB: > { %s2224_s25 = sadd.s32 4294967295, %s2474_s24   ;;  %p2228_p0 = scmp.ge.s32.totalorder %s2474_s24, 1  ;;  %s2474_s24 = sphi %s2517_s24, %s17_s24  }
   0x2   : > { %p237_p1 = scmp.lt.s32.totalorder %s2474_s24, 3 }
   0x4   : > { %p238_p2 = pnand %p2228_p0, %p237_p1 }
   0x6   : > { %241 = sbr.rel (%p238_p2) target bundleno = 718 (0x2ce), region = 48 }
   0xd   : > { %v312_v0 = vld [vmem:[%s3761_s1] sm:$0xf]  ;;  %vm388_vm0 = vcmask 1043456   ;;  %p269_p3 = scmp.lt.s32.totalorder %s2224_s25, 1  ;;  %vm339_vm1 = vcmask 64512   ;;  %vm591_vm2 = vcmask 261120   ;;  %v705_v53 = vlaneseq }
   0xe   : > { %2379 = vmatprep.subr.msk.bf16.mxu0 %vm388_vm0, %v312_v0  ;;  %v390_v1 = vsel %vm388_vm0, %v312_v0, 0  ;;  %v2476_v50 = vmov 0.0   ;;  %vm601_vm3 = vcmask 253952   ;;  %vm594_vm4 = vcmask 254976   ;;  %v2389_v51 = vld [vmem:[%s3765_s5] sm:$0xff]   ;;  %v2390_v52 = vld [vmem:[%s3765_s5 + $0x8] sm:$0xff]  }
   0xf   : > { %2310 = vmatpush3.bf16.msra.mxu0 %v390_v1  ;;  %s3922_s25 = smov (!%p269_p3, %s2224_s25), 1  ;;  %592 = vst.msk [vmem:[#allocation2] sm:$0xff] %vm591_vm2, %v2476_v50  ;;  %593 = vst.msk [vmem:[#allocation2 + $0x8] sm:$0xff] %vm591_vm2, %v2476_v50  ;;  %2343 = vmatprep.subr.bf16.mxu1 %v2389_v51  ;;  %v706_v54 = vshrl.u32 %v705_v53, 7  ;;  %v314_v56 = vld [vmem:[%s3763_s3] sm:$0x7] }
  0x10   : > { %s2272_s28 = sshll.u32 %s3922_s25, 8  ;;  %597 = vst.msk [vmem:[#allocation2 + $0x198] sm:$0xff] %vm591_vm2, %v2476_v50  ;;  %598 = vst.msk [vmem:[#allocation2 + $0x1a0] sm:$0xff] %vm591_vm2, %v2476_v50  ;;  %2344 = vmatpush3.bf16.msra.mxu1 %v2389_v51  ;;  %v2637_v63 = vld [vmem:[%s3762_s2] ss:$0 sm:$0xff] }
  0x11   : > { %s2536_s8 = scalar_lea.vmem %s3760_s0, %s2272_s28  ;;  %603 = vst.msk [vmem:[#allocation2 + $0x30] sm:$0x1] %vm601_vm3, %v2476_v50  ;;  %602 = vst.msk [vmem:[#allocation2 + $0x18] sm:$0x1] %vm601_vm3, %v2476_v50  ;;  %2345 = vmatprep.subr.bf16.mxu1 %v2390_v52  ;;  %v707_v55 = vsub.s32 0, %v706_v54  ;;  %v807_v58 = vsub.s32 1, %v706_v54  ;;  %s3659_s30 = scalar_lea.vmem %s3767_s7, %s2272_s28 }
  0x12   : > { %v280_v2 = vld [vmem:[%s2536_s8] sm:$0xff]  ;;  %v281_v3 = vld [vmem:[%s2536_s8 + $0x8] sm:$0xff]  ;;  %v282_v4 = vld [vmem:[%s2536_s8 + $0x10] sm:$0xff]  ;;  %604 = vst.msk [vmem:[#allocation2 + $0x48] sm:$0x1] %vm601_vm3, %v2476_v50  ;;  %v907_v61 = vsub.s32 2, %v706_v54 }
  0x13   : > { %v323_v5 = vpack.c.bf16 %v281_v3, %v280_v2  ;;  %v283_v6 = vld [vmem:[%s2536_s8 + $0x18] sm:$0xff]  ;;  %v284_v7 = vld [vmem:[%s2536_s8 + $0x20] sm:$0xff]  ;;  %v285_v8 = vld [vmem:[%s2536_s8 + $0x28] sm:$0xff]  ;;  %605 = vst.msk [vmem:[#allocation2 + $0x60] sm:$0x1] %vm601_vm3, %v2476_v50  ;;  %v2631_v57 = vrot.slane %v314_v56, %v707_v55  ;;  %v2644_v1 = vrot.slane %v314_v56, %v807_v58 }
  0x14   : > { %v324_v9 = vpack.c.bf16 %v283_v6, %v282_v4  ;;  %v325_v10 = vpack.c.bf16 %v285_v8, %v284_v7  ;;  %v286_v11 = vld [vmem:[%s2536_s8 + $0x30] sm:$0xff]  ;;  %v287_v12 = vld [vmem:[%s2536_s8 + $0x38] sm:$0xff]  ;;  %v288_v13 = vld [vmem:[%s2536_s8 + $0x40] sm:$0xff]  ;;  %606 = vst.msk [vmem:[#allocation2 + $0x78] sm:$0x1] %vm601_vm3, %v2476_v50  ;;  %2346 = vmatpush3.bf16.msra.mxu1 %v2390_v52  ;;  %v2648_v8 = vrot.slane %v314_v56, %v907_v61 }
  0x15   : > { %2311 = vmatprep.mubr.msk.bf16.mxu0 %vm339_vm1, %v323_v5  ;;  %v289_v14 = vld [vmem:[%s2536_s8 + $0x48] sm:$0xff]  ;;  %v326_v15 = vpack.c.bf16 %v287_v12, %v286_v11  ;;  %v290_v17 = vld [vmem:[%s2536_s8 + $0x50] sm:$0xff]  ;;  %v291_v18 = vld [vmem:[%s2536_s8 + $0x58] sm:$0xff]  ;;  %607 = vst.msk [vmem:[#allocation2 + $0x90] sm:$0x1] %vm601_vm3, %v2476_v50 }
  0x16   : > { %2312 = vmatmul.mubr.msk.bf16.vlgmr.msra.gmra.mrb[0].mxu0 %vm339_vm1, %v324_v9  ;;  %v327_v16 = vpack.c.bf16 %v289_v14, %v288_v13  ;;  %v292_v19 = vld [vmem:[%s2536_s8 + $0x60] sm:$0xff]  ;;  %v293_v20 = vld [vmem:[%s2536_s8 + $0x68] sm:$0xff]  ;;  %v328_v21 = vpack.c.bf16 %v291_v18, %v290_v17  ;;  %v294_v23 = vld [vmem:[%s2536_s8 + $0x70] sm:$0xff]  ;;  %608 = vst.msk [vmem:[#allocation2 + $0xa8] sm:$0x1] %vm601_vm3, %v2476_v50 }
  0x17   : > { %2315 = vmatprep.mubr.msk.bf16.mxu0 %vm339_vm1, %v325_v10  ;;  %v329_v22 = vpack.c.bf16 %v293_v20, %v292_v19  ;;  %v295_v24 = vld [vmem:[%s2536_s8 + $0x78] sm:$0xff]  ;;  %v296_v25 = vld [vmem:[%s2536_s8 + $0x80] sm:$0xff]  ;;  %v297_v26 = vld [vmem:[%s2536_s8 + $0x88] sm:$0xff]  ;;  %609 = vst.msk [vmem:[#allocation2 + $0xc0] sm:$0x1] %vm601_vm3, %v2476_v50 }
  0x18   : > { %v330_v27 = vpack.c.bf16 %v295_v24, %v294_v23  ;;  %v331_v28 = vpack.c.bf16 %v297_v26, %v296_v25  ;;  %v298_v29 = vld [vmem:[%s2536_s8 + $0x90] sm:$0xff]  ;;  %v299_v30 = vld [vmem:[%s2536_s8 + $0x98] sm:$0xff]  ;;  %v300_v31 = vld [vmem:[%s2536_s8 + $0xa0] sm:$0xff]  ;;  %610 = vst.msk [vmem:[#allocation2 + $0xd8] sm:$0x1] %vm601_vm3, %v2476_v50 }
  0x19   : > { %v301_v32 = vld [vmem:[%s2536_s8 + $0xa8] sm:$0xff]  ;;  %v332_v33 = vpack.c.bf16 %v299_v30, %v298_v29  ;;  %v302_v35 = vld [vmem:[%s2536_s8 + $0xb0] sm:$0xff]  ;;  %v303_v36 = vld [vmem:[%s2536_s8 + $0xb8] sm:$0xff]  ;;  %611 = vst.msk [vmem:[#allocation2 + $0xf0] sm:$0x1] %vm601_vm3, %v2476_v50 }
  0x1a   : > { %v333_v34 = vpack.c.bf16 %v301_v32, %v300_v31  ;;  %v304_v37 = vld [vmem:[%s2536_s8 + $0xc0] sm:$0xff]  ;;  %v305_v38 = vld [vmem:[%s2536_s8 + $0xc8] sm:$0xff]  ;;  %v334_v39 = vpack.c.bf16 %v303_v36, %v302_v35  ;;  %v306_v41 = vld [vmem:[%s2536_s8 + $0xd0] sm:$0xff]  ;;  %612 = vst.msk [vmem:[#allocation2 + $0x108] sm:$0x1] %vm601_vm3, %v2476_v50 }
  0x1b   : > { %v335_v40 = vpack.c.bf16 %v305_v38, %v304_v37  ;;  %v307_v42 = vld [vmem:[%s2536_s8 + $0xd8] sm:$0xff]  ;;  %v308_v43 = vld [vmem:[%s2536_s8 + $0xe0] sm:$0xff]  ;;  %v309_v44 = vld [vmem:[%s2536_s8 + $0xe8] sm:$0xff]  ;;  %613 = vst.msk [vmem:[#allocation2 + $0x120] sm:$0x1] %vm601_vm3, %v2476_v50 }
  0x1c   : > { %v336_v45 = vpack.c.bf16 %v307_v42, %v306_v41  ;;  %v337_v46 = vpack.c.bf16 %v309_v44, %v308_v43  ;;  %v310_v47 = vld [vmem:[%s2536_s8 + $0xf0] sm:$0xff]  ;;  %v311_v48 = vld [vmem:[%s2536_s8 + $0xf8] sm:$0xff]  ;;  %614 = vst.msk [vmem:[#allocation2 + $0x138] sm:$0x1] %vm601_vm3, %v2476_v50  ;;  %615 = vst.msk [vmem:[#allocation2 + $0x150] sm:$0x1] %vm601_vm3, %v2476_v50 }
  0x1d   : > { %v338_v49 = vpack.c.bf16 %v311_v48, %v310_v47  ;;  %616 = vst.msk [vmem:[#allocation2 + $0x168] sm:$0x1] %vm601_vm3, %v2476_v50  ;;  %617 = vst.msk [vmem:[#allocation2 + $0x180] sm:$0x1] %vm601_vm3, %v2476_v50  ;;  %v673_v59 = vld [vmem:[#allocation2] sm:$0xff]  ;;  %v674_v60 = vld [vmem:[#allocation2 + $0x8] sm:$0xff] }
  0x1e   : > { %2316 = vmatmul.mubr.msk.bf16.gmra.mrb[4].mxu0 %vm339_vm1, %v326_v15  ;;  %618 = vst.msk [vmem:[#allocation2 + $0x29] sm:$0x1] %vm601_vm3, %v2476_v50  ;;  %619 = vst.msk [vmem:[#allocation2 + $0x41] sm:$0x1] %vm601_vm3, %v2476_v50  ;;  %v709_v62 = vmul.f32 %v2631_v57, %v673_v59  ;;  %v2642_v0 = vld [vmem:[%s3764_s4] ss:$0 sm:$0xff]  ;;  %v710_v2 = vmul.f32 %v2631_v57, %v674_v60 }
  0x1f   : > { %2319 = vmatprep.mubr.msk.bf16.mxu0 %vm339_vm1, %v327_v16  ;;  %620 = vst.msk [vmem:[#allocation2 + $0x59] sm:$0x1] %vm601_vm3, %v2476_v50  ;;  %621 = vst.msk [vmem:[#allocation2 + $0x71] sm:$0x1] %vm601_vm3, %v2476_v50  ;;  %v773_v3 = vld [vmem:[#allocation2 + $0x1] sm:$0xff] }
  0x20   : > { %622 = vst.msk [vmem:[#allocation2 + $0x89] sm:$0x1] %vm601_vm3, %v2476_v50  ;;  %623 = vst.msk [vmem:[#allocation2 + $0xa1] sm:$0x1] %vm601_vm3, %v2476_v50  ;;  %v741_v9 = vadd.f32 %v2642_v0, %v709_v62  ;;  %v742_v12 = vadd.f32 %v2642_v0, %v710_v2  ;;  %v809_v13 = vmul.f32 %v2644_v1, %v773_v3  ;;  %v873_v17 = vld [vmem:[#allocation2 + $0x2] sm:$0xff] }
  0x21   : > { %624 = vst.msk [vmem:[#allocation2 + $0xb9] sm:$0x1] %vm601_vm3, %v2476_v50  ;;  %625 = vst.msk [vmem:[#allocation2 + $0xd1] sm:$0x1] %vm601_vm3, %v2476_v50  ;;  %v315_v20 = vld [vmem:[%s3763_s3 + $0x4] sm:$0x7]  ;;  %v909_v23 = vmul.f32 %v2648_v8, %v873_v17 }
  0x22   : > { %626 = vst.msk [vmem:[#allocation2 + $0xe9] sm:$0x1] %vm601_vm3, %v2476_v50  ;;  %627 = vst.msk [vmem:[#allocation2 + $0x101] sm:$0x1] %vm601_vm3, %v2476_v50  ;;  %v316_v26 = vld [vmem:[%s3763_s3 + $0x8] sm:$0x7]  ;;  %v2679_v36 = vrot.slane %v315_v20, %v807_v58  ;;  %v2685_v42 = vrot.slane %v315_v20, %v907_v61 }
  0x23   : > { %628 = vst.msk [vmem:[#allocation2 + $0x119] sm:$0x1] %vm601_vm3, %v2476_v50  ;;  %629 = vst.msk [vmem:[#allocation2 + $0x131] sm:$0x1] %vm601_vm3, %v2476_v50  ;;  %v2687_v43 = vrot.slane %v316_v26, %v707_v55 }
  0x24   : > { %630 = vst.msk [vmem:[#allocation2 + $0x149] sm:$0x1] %vm601_vm3, %v2476_v50  ;;  %631 = vst.msk [vmem:[#allocation2 + $0x161] sm:$0x1] %vm601_vm3, %v2476_v50 }
  0x25   : > { %632 = vst.msk [vmem:[#allocation2 + $0x179] sm:$0x1] %vm601_vm3, %v2476_v50  ;;  %633 = vst.msk [vmem:[#allocation2 + $0x191] sm:$0x1] %vm601_vm3, %v2476_v50 }
  0x26   : > { %2320 = vmatmul.mubr.msk.bf16.gmra.mrb[8].mxu0 %vm339_vm1, %v328_v21  ;;  %595 = vst.msk [vmem:[#allocation2 + $0x10] sm:$0x3] %vm594_vm4, %v2476_v50  ;;  %599 = vst.msk [vmem:[#allocation2 + $0x1a8] sm:$0x3] %vm594_vm4, %v2476_v50  ;;  %v841_v21 = vadd.f32 %v809_v13, %v741_v9  ;;  %v2700_v50 = vrot.slane %v316_v26, %v907_v61 }
  0x27   : > { %2323 = vmatprep.mubr.msk.bf16.mxu0 %vm339_vm1, %v329_v22 }
  0x2d   : > { %v774_v4 = vld [vmem:[#allocation2 + $0x9] sm:$0xff] }
  0x2e   : > { %2324 = vmatmul.mubr.msk.bf16.gmra.mrb[12].mxu0 %vm339_vm1, %v330_v27  ;;  %v810_v14 = vmul.f32 %v2644_v1, %v774_v4  ;;  %v874_v18 = vld [vmem:[#allocation2 + $0xa] sm:$0xff]  ;;  %v2669_v27 = vrot.slane %v315_v20, %v707_v55 }
  0x2f   : > { %2327 = vmatprep.mubr.msk.bf16.mxu0 %vm339_vm1, %v331_v28  ;;  %v910_v24 = vmul.f32 %v2648_v8, %v874_v18 }
  0x30   : > { %v842_v22 = vadd.f32 %v810_v14, %v742_v12 }
  0x32   : > { %v2677_v35 = vadd.f32 %v910_v24, %v842_v22 }
  0x36   : > { %2328 = vmatmul.mubr.msk.bf16.gmra.mrb[16].mxu0 %vm339_vm1, %v332_v33 }
  0x37   : > { %2331 = vmatprep.mubr.msk.bf16.mxu0 %vm339_vm1, %v333_v34  ;;  %v941_v34 = vadd.f32 %v909_v23, %v841_v21 }
  0x3e   : > { %2332 = vmatmul.mubr.msk.bf16.gmra.mrb[20].mxu0 %vm339_vm1, %v334_v39 }
  0x3f   : > { %2335 = vmatprep.mubr.msk.bf16.mxu0 %vm339_vm1, %v335_v40 }
  0x46   : > { %2336 = vmatmul.mubr.msk.bf16.gmra.mrb[24].mxu0 %vm339_vm1, %v336_v45 }
  0x47   : > { %2339 = vmatprep.mubr.msk.bf16.mxu0 %vm339_vm1, %v337_v46 }
  0x4e   : > { %2340 = vmatmul.mubr.msk.bf16.gmra.mrb[28].mxu0 %vm339_vm1, %v338_v49  ;;  %v2698_v49 = vrot.slane %v316_v26, %v807_v58 }
  0xe9   : > { %v2313_v5 = vpop.f32.mrb[0].mxu0 }
  0xea   : > { %v561_v6 = vadd.f32 %v2313_v5, %v2637_v63  ;;  %v426_v7 = vpop.f32.mrb[1].mxu0 }
  0xeb   : > { %v559_v10 = vadd.f32 %v2637_v63, %v426_v7  ;;  %v2314_v11 = vpop.f32.mrb[2].mxu0 }
  0xec   : > { %636 = vst.msk [vmem:[#allocation2 + $0x31] sm:$0xff] %vm591_vm2, %v561_v6  ;;  %v562_v15 = vadd.f32 %v2314_v11, %v2637_v63  ;;  %v429_v16 = vpop.f32.mrb[3].mxu0 }
  0xed   : > { %634 = vst.msk [vmem:[#allocation2 + $0x19] sm:$0xff] %vm591_vm2, %v559_v10  ;;  %v560_v19 = vadd.f32 %v2637_v63, %v429_v16 }
  0xee   : > { %637 = vst.msk [vmem:[#allocation2 + $0x39] sm:$0xff] %vm591_vm2, %v562_v15 }
  0xef   : > { %635 = vst.msk [vmem:[#allocation2 + $0x21] sm:$0xff] %vm591_vm2, %v560_v19 }
  0xf1   : > { %v2317_v25 = vpop.f32.mrb[4].mxu0 }
  0xf2   : > { %v565_v28 = vadd.f32 %v2317_v25, %v2637_v63  ;;  %v442_v29 = vpop.f32.mrb[5].mxu0 }
  0xf3   : > { %v2672_v30 = vld [vmem:[#allocation2 + $0x30] sm:$0xff]  ;;  %v563_v32 = vadd.f32 %v2637_v63, %v442_v29  ;;  %v2318_v33 = vpop.f32.mrb[6].mxu0 }
  0xf4   : > { %v2674_v31 = vld [vmem:[#allocation2 + $0x31] sm:$0xff]  ;;  %v713_v37 = vmul.f32 %v2631_v57, %v2672_v30  ;;  %v775_v39 = vld [vmem:[#allocation2 + $0x19] sm:$0xff]  ;;  %640 = vst.msk [vmem:[#allocation2 + $0x61] sm:$0xff] %vm591_vm2, %v565_v28  ;;  %v566_v40 = vadd.f32 %v2318_v33, %v2637_v63  ;;  %v445_v41 = vpop.f32.mrb[7].mxu0  ;;  %v2707_v53 = vmul.f32 %v2669_v27, %v2672_v30 }
  0xf5   : > { %v675_v38 = vld [vmem:[#allocation2 + $0x18] sm:$0xff]  ;;  %638 = vst.msk [vmem:[#allocation2 + $0x49] sm:$0xff] %vm591_vm2, %v563_v32  ;;  %v564_v48 = vadd.f32 %v2637_v63, %v445_v41  ;;  %v813_v52 = vmul.f32 %v2644_v1, %v2674_v31  ;;  %v811_v59 = vmul.f32 %v2644_v1, %v775_v39 }
  0xf6   : > { %v711_v44 = vmul.f32 %v2631_v57, %v675_v38  ;;  %v2690_v45 = vld [vmem:[#allocation2 + $0x38] sm:$0xff]  ;;  %v745_v51 = vadd.f32 %v2642_v0, %v713_v37  ;;  %v676_v56 = vld [vmem:[#allocation2 + $0x20] sm:$0xff]  ;;  %641 = vst.msk [vmem:[#allocation2 + $0x69] sm:$0xff] %vm591_vm2, %v566_v40  ;;  %v1009_v2 = vmul.f32 %v2669_v27, %v675_v38  ;;  %v1109_v38 = vmul.f32 %v2679_v36, %v775_v39 }
  0xf7   : > { %v2692_v46 = vld [vmem:[#allocation2 + $0x39] sm:$0xff]  ;;  %v714_v54 = vmul.f32 %v2631_v57, %v2690_v45  ;;  %v712_v60 = vmul.f32 %v2631_v57, %v676_v56  ;;  %v776_v61 = vld [vmem:[#allocation2 + $0x21] sm:$0xff]  ;;  %639 = vst.msk [vmem:[#allocation2 + $0x51] sm:$0xff] %vm591_vm2, %v564_v48  ;;  %v2738_v10 = vmul.f32 %v2669_v27, %v2690_v45  ;;  %v1010_v13 = vmul.f32 %v2669_v27, %v676_v56 }
  0xf8   : > { %v2694_v47 = vld [vmem:[#allocation2 + $0x32] sm:$0xff]  ;;  %v2711_v55 = vld [vmem:[#allocation2 + $0x3a] sm:$0xff]  ;;  %v743_v58 = vadd.f32 %v2642_v0, %v711_v44  ;;  %v814_v4 = vmul.f32 %v2644_v1, %v2692_v46  ;;  %v2732_v7 = vld [vmem:[#allocation2 + $0x22] sm:$0xff]  ;;  %v2734_v9 = vadd.f32 %v813_v52, %v745_v51  ;;  %v812_v15 = vmul.f32 %v2644_v1, %v776_v61 }
  0xf9   : > { %v2717_v62 = vld [vmem:[#allocation2 + $0x1a] sm:$0xff]  ;;  %v746_v3 = vadd.f32 %v2642_v0, %v714_v54  ;;  %v2726_v5 = vmul.f32 %v2648_v8, %v2694_v47  ;;  %v2730_v6 = vmul.f32 %v2648_v8, %v2711_v55  ;;  %v744_v11 = vadd.f32 %v2642_v0, %v712_v60  ;;  %v2321_v12 = vpop.f32.mrb[8].mxu0 }
  0xfa   : > { %v2742_v14 = vadd.f32 %v811_v59, %v743_v58  ;;  %v2747_v16 = vmul.f32 %v2648_v8, %v2717_v62  ;;  %v569_v17 = vadd.f32 %v2321_v12, %v2637_v63  ;;  %v458_v18 = vpop.f32.mrb[9].mxu0  ;;  %v2754_v20 = vmul.f32 %v2648_v8, %v2732_v7 }
  0xfb   : > { %v2750_v19 = vadd.f32 %v814_v4, %v746_v3  ;;  %v681_v21 = vld [vmem:[#allocation2 + $0x60] sm:$0xff]  ;;  %v567_v23 = vadd.f32 %v2637_v63, %v458_v18  ;;  %v2322_v24 = vpop.f32.mrb[10].mxu0  ;;  %v1041_v25 = vadd.f32 %v1009_v2, %v941_v34  ;;  %v2759_v26 = vadd.f32 %v812_v15, %v744_v11 }
  0xfc   : > { %v2756_v22 = vld [vmem:[#allocation2 + $0x61] sm:$0xff]  ;;  %v717_v28 = vmul.f32 %v2631_v57, %v681_v21  ;;  %v2764_v32 = vld [vmem:[#allocation2 + $0x49] sm:$0xff]  ;;  %644 = vst.msk [vmem:[#allocation2 + $0x91] sm:$0xff] %vm591_vm2, %v569_v17  ;;  %v570_v33 = vadd.f32 %v2322_v24, %v2637_v63  ;;  %v461_v37 = vpop.f32.mrb[11].mxu0  ;;  %v1042_v51 = vadd.f32 %v1010_v13, %v2677_v35  ;;  %v1110_v52 = vmul.f32 %v2679_v36, %v776_v61 }
  0xfd   : > { %3779 = vst [vmem:[#allocation3_spill] sm:$0xff] %v2756_v22  ;;  %v2762_v29 = vld [vmem:[#allocation2 + $0x48] sm:$0xff]  ;;  %642 = vst.msk [vmem:[#allocation2 + $0x79] sm:$0xff] %vm591_vm2, %v567_v23  ;;  %v568_v48 = vadd.f32 %v2637_v63, %v461_v37  ;;  %v817_v39 = vmul.f32 %v2644_v1, %v2756_v22  ;;  %v2783_v56 = vmul.f32 %v2669_v27, %v681_v21 }
  0xfe   : > { %v715_v40 = vmul.f32 %v2631_v57, %v2762_v29  ;;  %v2771_v41 = vld [vmem:[#allocation2 + $0x68] sm:$0xff]  ;;  %v749_v54 = vadd.f32 %v2642_v0, %v717_v28  ;;  %v2787_v60 = vld [vmem:[#allocation2 + $0x50] sm:$0xff]  ;;  %645 = vst.msk [vmem:[#allocation2 + $0x99] sm:$0xff] %vm591_vm2, %v570_v33  ;;  %v815_v61 = vmul.f32 %v2644_v1, %v2764_v32  ;;  %v2797_v3 = vmul.f32 %v2669_v27, %v2762_v29 }
  0xff   : > { %v2773_v34 = vld [vmem:[#allocation2 + $0x69] sm:$0xff]  ;;  %3780 = vst [vmem:[#allocation4_spill] sm:$0xff] %v2783_v56  ;;  %v718_v58 = vmul.f32 %v2631_v57, %v2771_v41  ;;  %v2789_v2 = vld [vmem:[#allocation2 + $0x51] sm:$0xff]  ;;  %v716_v4 = vmul.f32 %v2631_v57, %v2787_v60  ;;  %643 = vst.msk [vmem:[#allocation2 + $0x81] sm:$0xff] %vm591_vm2, %v568_v48  ;;  %v2819_v23 = vmul.f32 %v2669_v27, %v2771_v41 }
 0x100   : > { %v881_v44 = vld [vmem:[#allocation2 + $0x62] sm:$0xff]  ;;  %v882_v59 = vld [vmem:[#allocation2 + $0x6a] sm:$0xff]  ;;  %v747_v35 = vadd.f32 %v2642_v0, %v715_v40  ;;  %v2803_v12 = vld [vmem:[#allocation2 + $0x52] sm:$0xff]  ;;  %v818_v15 = vmul.f32 %v2644_v1, %v2773_v34  ;;  %v2815_v21 = vadd.f32 %v817_v39, %v749_v54  ;;  %v816_v28 = vmul.f32 %v2644_v1, %v2789_v2 }
 0x101   : > { %v2801_v11 = vld [vmem:[#allocation2 + $0x4a] sm:$0xff]  ;;  %v750_v13 = vadd.f32 %v2642_v0, %v718_v58  ;;  %v2810_v17 = vmul.f32 %v2648_v8, %v881_v44  ;;  %v2813_v18 = vmul.f32 %v2648_v8, %v882_v59  ;;  %3784 = vst [vmem:[#allocation8_spill] sm:$0xff] %v2819_v23  ;;  %v748_v24 = vadd.f32 %v2642_v0, %v716_v4  ;;  %v2325_v33 = vpop.f32.mrb[12].mxu0 }
 0x102   : > { %3783 = vst [vmem:[#allocation7_spill] sm:$0xff] %v2815_v21  ;;  %v2824_v37 = vadd.f32 %v815_v61, %v747_v35  ;;  %v2828_v40 = vmul.f32 %v2648_v8, %v2801_v11  ;;  %v2832_v44 = vmul.f32 %v2648_v8, %v2803_v12  ;;  %v573_v48 = vadd.f32 %v2325_v33, %v2637_v63  ;;  %v474_v54 = vpop.f32.mrb[13].mxu0 }
 0x103   : > { %3781 = vst [vmem:[#allocation5_spill] sm:$0xff] %v2810_v17  ;;  %3782 = vst [vmem:[#allocation6_spill] sm:$0xff] %v2813_v18  ;;  %v2835_v39 = vadd.f32 %v818_v15, %v750_v13  ;;  %v2839_v58 = vmul.f32 %v2669_v27, %v2787_v60  ;;  %v685_v59 = vld [vmem:[#allocation2 + $0x90] sm:$0xff]  ;;  %v571_v61 = vadd.f32 %v2637_v63, %v474_v54  ;;  %v2326_v4 = vpop.f32.mrb[14].mxu0 }
 0x104   : > { %3785 = vst [vmem:[#allocation9_spill] sm:$0xff] %v2824_v37  ;;  %3786 = vst [vmem:[#allocation10_spill] sm:$0xff] %v2828_v40  ;;  %v2841_v35 = vld [vmem:[#allocation2 + $0x91] sm:$0xff]  ;;  %v1141_v18 = vadd.f32 %v1109_v38, %v1041_v25  ;;  %v2844_v17 = vadd.f32 %v816_v28, %v748_v24  ;;  %v721_v21 = vmul.f32 %v2631_v57, %v685_v59  ;;  %v2847_v33 = vld [vmem:[#allocation2 + $0x79] sm:$0xff]  ;;  %v477_v15 = vpop.f32.mrb[15].mxu0 }
 0x105   : > { %3787 = vst [vmem:[#allocation11_spill] sm:$0xff] %v2832_v44  ;;  %3788 = vst [vmem:[#allocation12_spill] sm:$0xff] %v2835_v39  ;;  %v683_v23 = vld [vmem:[#allocation2 + $0x78] sm:$0xff]  ;;  %v574_v13 = vadd.f32 %v2326_v4, %v2637_v63  ;;  %v1142_v39 = vadd.f32 %v1110_v52, %v1042_v51  ;;  %v572_v25 = vadd.f32 %v2637_v63, %v477_v15 }
 0x106   : > { %3789 = vst [vmem:[#allocation13_spill] sm:$0xff] %v2841_v35  ;;  %3790 = vst [vmem:[#allocation14_spill] sm:$0xff] %v2844_v17  ;;  %v719_v56 = vmul.f32 %v2631_v57, %v683_v23  ;;  %v686_v22 = vld [vmem:[#allocation2 + $0x98] sm:$0xff]  ;;  %v1209_v38 = vmul.f32 %v2685_v42, %v2717_v62  ;;  %v1210_v24 = vmul.f32 %v2685_v42, %v2732_v7  ;;  %v2869_v15 = vld [vmem:[#allocation2 + $0x81] sm:$0xff] }
 0x107   : > { %3791 = vst [vmem:[#allocation15_spill] sm:$0xff] %v2847_v33  ;;  %648 = vst.msk [vmem:[#allocation2 + $0xc1] sm:$0xff] %vm591_vm2, %v573_v48  ;;  %v2852_v44 = vld [vmem:[#allocation2 + $0x99] sm:$0xff]  ;;  %v753_v28 = vadd.f32 %v2642_v0, %v721_v21  ;;  %v821_v51 = vmul.f32 %v2644_v1, %v2841_v35  ;;  %v2864_v52 = vmul.f32 %v2669_v27, %v685_v59 }
 0x108   : > { %3792 = vst [vmem:[#allocation16_spill] sm:$0xff] %v2852_v44  ;;  %v885_v54 = vld [vmem:[#allocation2 + $0x92] sm:$0xff]  ;;  %646 = vst.msk [vmem:[#allocation2 + $0xa9] sm:$0xff] %vm591_vm2, %v571_v61  ;;  %v722_v48 = vmul.f32 %v2631_v57, %v686_v22  ;;  %v886_v4 = vld [vmem:[#allocation2 + $0x9a] sm:$0xff]  ;;  %v751_v62 = vadd.f32 %v2642_v0, %v719_v56  ;;  %v819_v7 = vmul.f32 %v2644_v1, %v2847_v33 }
 0x109   : > { %3793 = vst [vmem:[#allocation17_spill] sm:$0xff] %v2864_v52  ;;  %v2867_v61 = vld [vmem:[#allocation2 + $0x80] sm:$0xff]  ;;  %649 = vst.msk [vmem:[#allocation2 + $0xc9] sm:$0xff] %vm591_vm2, %v574_v13  ;;  %v2876_v21 = vmul.f32 %v2669_v27, %v683_v23  ;;  %v822_v56 = vmul.f32 %v2644_v1, %v2852_v44  ;;  %v2889_v13 = vmul.f32 %v2648_v8, %v885_v54 }
 0x10a   : > { %v720_v59 = vmul.f32 %v2631_v57, %v2867_v61  ;;  %v2880_v35 = vld [vmem:[#allocation2 + $0x7a] sm:$0xff]  ;;  %v2882_v52 = vld [vmem:[#allocation2 + $0x82] sm:$0xff]  ;;  %647 = vst.msk [vmem:[#allocation2 + $0xb1] sm:$0xff] %vm591_vm2, %v572_v25  ;;  %v754_v17 = vadd.f32 %v2642_v0, %v722_v48  ;;  %v2892_v23 = vmul.f32 %v2648_v8, %v886_v4  ;;  %v2897_v33 = vmul.f32 %v2669_v27, %v686_v22  ;;  %v2329_v48 = vpop.f32.mrb[16].mxu0 }
 0x10b   : > { %3794 = vst [vmem:[#allocation18_spill] sm:$0xff] %v2876_v21  ;;  %3795 = vst [vmem:[#allocation19_spill] sm:$0xff] %v2880_v35  ;;  %v2894_v21 = vadd.f32 %v821_v51, %v753_v28  ;;  %v820_v25 = vmul.f32 %v2644_v1, %v2869_v15  ;;  %v2902_v37 = vadd.f32 %v819_v7, %v751_v62  ;;  %v490_v22 = vpop.f32.mrb[17].mxu0 }
 0x10c   : > { %3796 = vst [vmem:[#allocation20_spill] sm:$0xff] %v2882_v52  ;;  %3797 = vst [vmem:[#allocation21_spill] sm:$0xff] %v2889_v13  ;;  %v752_v40 = vadd.f32 %v2642_v0, %v720_v59  ;;  %v2906_v54 = vmul.f32 %v2648_v8, %v2880_v35  ;;  %v2910_v4 = vmul.f32 %v2648_v8, %v2882_v52  ;;  %v2330_v13 = vpop.f32.mrb[18].mxu0 }
 0x10d   : > { %3798 = vst [vmem:[#allocation22_spill] sm:$0xff] %v2892_v23  ;;  %3799 = vst [vmem:[#allocation23_spill] sm:$0xff] %v2894_v21  ;;  %v577_v28 = vadd.f32 %v2329_v48, %v2637_v63  ;;  %v2913_v51 = vadd.f32 %v822_v56, %v754_v17  ;;  %v2917_v59 = vmul.f32 %v2669_v27, %v2867_v61  ;;  %v493_v56 = vpop.f32.mrb[19].mxu0 }
 0x10e   : > { %3800 = vst [vmem:[#allocation24_spill] sm:$0xff] %v2897_v33  ;;  %3801 = vst [vmem:[#allocation25_spill] sm:$0xff] %v2902_v37  ;;  %v689_v23 = vld [vmem:[#allocation2 + $0xc0] sm:$0xff]  ;;  %v575_v7 = vadd.f32 %v2637_v63, %v490_v22  ;;  %v1241_v21 = vadd.f32 %v1209_v38, %v1141_v18  ;;  %v2920_v44 = vadd.f32 %v820_v25, %v752_v40 }
 0x10f   : > { %3802 = vst [vmem:[#allocation26_spill] sm:$0xff] %v2906_v54  ;;  %3803 = vst [vmem:[#allocation27_spill] sm:$0xff] %v2910_v4  ;;  %v789_v62 = vld [vmem:[#allocation2 + $0xc1] sm:$0xff]  ;;  %v725_v33 = vmul.f32 %v2631_v57, %v689_v23  ;;  %v2923_v54 = vld [vmem:[#allocation2 + $0xa9] sm:$0xff]  ;;  %v578_v17 = vadd.f32 %v2330_v13, %v2637_v63  ;;  %v1242_v48 = vadd.f32 %v1210_v24, %v1142_v39 }
 0x110   : > { %3804 = vst [vmem:[#allocation28_spill] sm:$0xff] %v2913_v51  ;;  %3805 = vst [vmem:[#allocation29_spill] sm:$0xff] %v2917_v59  ;;  %v687_v4 = vld [vmem:[#allocation2 + $0xa8] sm:$0xff]  ;;  %v576_v18 = vadd.f32 %v2637_v63, %v493_v56  ;;  %v1310_v40 = vmul.f32 %v2687_v43, %v2672_v30  ;;  %v1311_v38 = vmul.f32 %v2687_v43, %v2690_v45 }
 0x111   : > { %3806 = vst [vmem:[#allocation30_spill] sm:$0xff] %v2920_v44  ;;  %3807 = vst [vmem:[#allocation31_spill] sm:$0xff] %v2923_v54  ;;  %v723_v51 = vmul.f32 %v2631_v57, %v687_v4  ;;  %v690_v37 = vld [vmem:[#allocation2 + $0xc8] sm:$0xff]  ;;  %v757_v13 = vadd.f32 %v2642_v0, %v725_v33  ;;  %v825_v39 = vmul.f32 %v2644_v1, %v789_v62  ;;  %v688_v44 = vld [vmem:[#allocation2 + $0xb0] sm:$0xff] }
 0x112   : > { %652 = vst.msk [vmem:[#allocation2 + $0xf1] sm:$0xff] %vm591_vm2, %v577_v28  ;;  %v2928_v52 = vld [vmem:[#allocation2 + $0xc9] sm:$0xff]  ;;  %650 = vst.msk [vmem:[#allocation2 + $0xd9] sm:$0xff] %vm591_vm2, %v575_v7  ;;  %v2939_v24 = vmul.f32 %v2669_v27, %v689_v23  ;;  %v726_v25 = vmul.f32 %v2631_v57, %v690_v37  ;;  %v2942_v7 = vld [vmem:[#allocation2 + $0xb1] sm:$0xff]  ;;  %v823_v45 = vmul.f32 %v2644_v1, %v2923_v54 }
 0x113   : > { %3808 = vst [vmem:[#allocation32_spill] sm:$0xff] %v2928_v52  ;;  %v889_v22 = vld [vmem:[#allocation2 + $0xc2] sm:$0xff]  ;;  %v890_v28 = vld [vmem:[#allocation2 + $0xca] sm:$0xff]  ;;  %3810 = vst [vmem:[#allocation34_spill] sm:$0xff] %v2942_v7  ;;  %v755_v30 = vadd.f32 %v2642_v0, %v723_v51  ;;  %v2949_v33 = vmul.f32 %v2669_v27, %v687_v4  ;;  %v724_v62 = vmul.f32 %v2631_v57, %v688_v44 }
 0x114   : > { %3809 = vst [vmem:[#allocation33_spill] sm:$0xff] %v2939_v24  ;;  %653 = vst.msk [vmem:[#allocation2 + $0xf9] sm:$0xff] %vm591_vm2, %v578_v17  ;;  %v887_v23 = vld [vmem:[#allocation2 + $0xaa] sm:$0xff]  ;;  %v888_v56 = vld [vmem:[#allocation2 + $0xb2] sm:$0xff]  ;;  %v758_v24 = vadd.f32 %v2642_v0, %v726_v25  ;;  %v826_v59 = vmul.f32 %v2644_v1, %v2928_v52  ;;  %v2957_v17 = vmul.f32 %v2648_v8, %v889_v22  ;;  %v2333_v25 = vpop.f32.mrb[20].mxu0 }
 0x115   : > { %3811 = vst [vmem:[#allocation35_spill] sm:$0xff] %v2949_v33  ;;  %651 = vst.msk [vmem:[#allocation2 + $0xe1] sm:$0xff] %vm591_vm2, %v576_v18  ;;  %v2960_v51 = vmul.f32 %v2648_v8, %v890_v28  ;;  %v2962_v54 = vadd.f32 %v825_v39, %v757_v13  ;;  %v2965_v4 = vmul.f32 %v2669_v27, %v690_v37  ;;  %v506_v39 = vpop.f32.mrb[21].mxu0 }
 0x116   : > { %3812 = vst [vmem:[#allocation36_spill] sm:$0xff] %v2957_v17  ;;  %v756_v33 = vadd.f32 %v2642_v0, %v724_v62  ;;  %v824_v18 = vmul.f32 %v2644_v1, %v2942_v7  ;;  %v2970_v35 = vadd.f32 %v823_v45, %v755_v30  ;;  %v2973_v52 = vmul.f32 %v2648_v8, %v887_v23  ;;  %v2334_v30 = vpop.f32.mrb[22].mxu0 }
 0x117   : > { %3813 = vst [vmem:[#allocation37_spill] sm:$0xff] %v2960_v51  ;;  %3814 = vst [vmem:[#allocation38_spill] sm:$0xff] %v2962_v54  ;;  %v2976_v22 = vmul.f32 %v2648_v8, %v888_v56  ;;  %v581_v13 = vadd.f32 %v2333_v25, %v2637_v63  ;;  %v2979_v28 = vadd.f32 %v826_v59, %v758_v24  ;;  %v509_v24 = vpop.f32.mrb[23].mxu0 }
 0x118   : > { %3815 = vst [vmem:[#allocation39_spill] sm:$0xff] %v2965_v4  ;;  %3816 = vst [vmem:[#allocation40_spill] sm:$0xff] %v2970_v35  ;;  %v2982_v37 = vmul.f32 %v2669_v27, %v688_v44  ;;  %v579_v17 = vadd.f32 %v2637_v63, %v506_v39  ;;  %v1342_v45 = vadd.f32 %v1310_v40, %v1241_v21 }
 0x119   : > { %3817 = vst [vmem:[#allocation41_spill] sm:$0xff] %v2973_v52  ;;  %3818 = vst [vmem:[#allocation42_spill] sm:$0xff] %v2976_v22  ;;  %v693_v62 = vld [vmem:[#allocation2 + $0xf0] sm:$0xff]  ;;  %v2985_v54 = vadd.f32 %v824_v18, %v756_v33  ;;  %v691_v56 = vld [vmem:[#allocation2 + $0xd8] sm:$0xff]  ;;  %v582_v59 = vadd.f32 %v2334_v30, %v2637_v63  ;;  %v1343_v44 = vadd.f32 %v1311_v38, %v1242_v48 }
 0x11a   : > { %3819 = vst [vmem:[#allocation43_spill] sm:$0xff] %v2979_v28  ;;  %3820 = vst [vmem:[#allocation44_spill] sm:$0xff] %v2982_v37  ;;  %v793_v51 = vld [vmem:[#allocation2 + $0xf1] sm:$0xff]  ;;  %v729_v23 = vmul.f32 %v2631_v57, %v693_v62  ;;  %v2988_v4 = vld [vmem:[#allocation2 + $0xd9] sm:$0xff]  ;;  %v727_v25 = vmul.f32 %v2631_v57, %v691_v56  ;;  %v580_v21 = vadd.f32 %v2637_v63, %v509_v24  ;;  %v2337_v37 = vpop.f32.mrb[24].mxu0 }
 0x11b   : > { %3821 = vst [vmem:[#allocation45_spill] sm:$0xff] %v2985_v54  ;;  %3822 = vst [vmem:[#allocation46_spill] sm:$0xff] %v2988_v4  ;;  %v694_v28 = vld [vmem:[#allocation2 + $0xf8] sm:$0xff]  ;;  %v1410_v40 = vmul.f32 %v2698_v49, %v2674_v31  ;;  %v1411_v33 = vmul.f32 %v2698_v49, %v2692_v46  ;;  %v3002_v48 = vmul.f32 %v2669_v27, %v693_v62 }
 0x11c   : > { %656 = vst.msk [vmem:[#allocation2 + $0x121] sm:$0xff] %vm591_vm2, %v581_v13  ;;  %v794_v22 = vld [vmem:[#allocation2 + $0xf9] sm:$0xff]  ;;  %654 = vst.msk [vmem:[#allocation2 + $0x109] sm:$0xff] %vm591_vm2, %v579_v17  ;;  %v761_v18 = vadd.f32 %v2642_v0, %v729_v23  ;;  %v829_v13 = vmul.f32 %v2644_v1, %v793_v51  ;;  %v730_v38 = vmul.f32 %v2631_v57, %v694_v28  ;;  %v3005_v17 = vld [vmem:[#allocation2 + $0xe1] sm:$0xff] }
 0x11d   : > { %v893_v39 = vld [vmem:[#allocation2 + $0xf2] sm:$0xff]  ;;  %3823 = vst [vmem:[#allocation47_spill] sm:$0xff] %v3002_v48  ;;  %v894_v30 = vld [vmem:[#allocation2 + $0xfa] sm:$0xff]  ;;  %3824 = vst [vmem:[#allocation48_spill] sm:$0xff] %v3005_v17  ;;  %v759_v24 = vadd.f32 %v2642_v0, %v727_v25  ;;  %v827_v52 = vmul.f32 %v2644_v1, %v2988_v4  ;;  %v3012_v23 = vmul.f32 %v2669_v27, %v691_v56 }
 0x11e   : > { %v692_v54 = vld [vmem:[#allocation2 + $0xe0] sm:$0xff]  ;;  %657 = vst.msk [vmem:[#allocation2 + $0x129] sm:$0xff] %vm591_vm2, %v582_v59  ;;  %655 = vst.msk [vmem:[#allocation2 + $0x111] sm:$0xff] %vm591_vm2, %v580_v21  ;;  %v762_v35 = vadd.f32 %v2642_v0, %v730_v38  ;;  %v830_v7 = vmul.f32 %v2644_v1, %v794_v22  ;;  %v3019_v59 = vmul.f32 %v2648_v8, %v893_v39 }
 0x11f   : > { %3825 = vst [vmem:[#allocation49_spill] sm:$0xff] %v3012_v23  ;;  %v728_v51 = vmul.f32 %v2631_v57, %v692_v54  ;;  %v891_v62 = vld [vmem:[#allocation2 + $0xda] sm:$0xff]  ;;  %v892_v48 = vld [vmem:[#allocation2 + $0xe2] sm:$0xff]  ;;  %v3022_v25 = vmul.f32 %v2648_v8, %v894_v30  ;;  %v3024_v4 = vadd.f32 %v829_v13, %v761_v18  ;;  %v3027_v56 = vmul.f32 %v2669_v27, %v694_v28  ;;  %v522_v13 = vpop.f32.mrb[25].mxu0 }
 0x120   : > { %3826 = vst [vmem:[#allocation50_spill] sm:$0xff] %v3019_v59  ;;  %v828_v21 = vmul.f32 %v2644_v1, %v3005_v17  ;;  %v3032_v38 = vadd.f32 %v827_v52, %v759_v24  ;;  %v3035_v22 = vmul.f32 %v2648_v8, %v891_v62  ;;  %v3038_v39 = vmul.f32 %v2648_v8, %v892_v48  ;;  %v2338_v52 = vpop.f32.mrb[26].mxu0 }
 0x121   : > { %3827 = vst [vmem:[#allocation51_spill] sm:$0xff] %v3022_v25  ;;  %3828 = vst [vmem:[#allocation52_spill] sm:$0xff] %v3024_v4  ;;  %v760_v23 = vadd.f32 %v2642_v0, %v728_v51  ;;  %v585_v18 = vadd.f32 %v2337_v37, %v2637_v63  ;;  %v3041_v30 = vadd.f32 %v830_v7, %v762_v35  ;;  %v525_v7 = vpop.f32.mrb[27].mxu0 }
 0x122   : > { %3829 = vst [vmem:[#allocation53_spill] sm:$0xff] %v3027_v56  ;;  %3830 = vst [vmem:[#allocation54_spill] sm:$0xff] %v3032_v38  ;;  %v3044_v28 = vmul.f32 %v2669_v27, %v692_v54  ;;  %v583_v59 = vadd.f32 %v2637_v63, %v522_v13  ;;  %v1442_v24 = vadd.f32 %v1410_v40, %v1342_v45  ;;  %v2341_v17 = vpop.f32.mrb[28].mxu0 }
 0x123   : > { %3831 = vst [vmem:[#allocation55_spill] sm:$0xff] %v3035_v22  ;;  %3832 = vst [vmem:[#allocation56_spill] sm:$0xff] %v3038_v39  ;;  %v697_v51 = vld [vmem:[#allocation2 + $0x120] sm:$0xff]  ;;  %v3047_v4 = vadd.f32 %v828_v21, %v760_v23  ;;  %v695_v48 = vld [vmem:[#allocation2 + $0x108] sm:$0xff]  ;;  %v586_v35 = vadd.f32 %v2338_v52, %v2637_v63  ;;  %v1443_v37 = vadd.f32 %v1411_v33, %v1343_v44 }
 0x124   : > { %3833 = vst [vmem:[#allocation57_spill] sm:$0xff] %v3041_v30  ;;  %3834 = vst [vmem:[#allocation58_spill] sm:$0xff] %v3044_v28  ;;  %v797_v25 = vld [vmem:[#allocation2 + $0x121] sm:$0xff]  ;;  %v733_v62 = vmul.f32 %v2631_v57, %v697_v51  ;;  %v795_v56 = vld [vmem:[#allocation2 + $0x109] sm:$0xff]  ;;  %v731_v54 = vmul.f32 %v2631_v57, %v695_v48  ;;  %v584_v45 = vadd.f32 %v2637_v63, %v525_v7 }
 0x125   : > { %3835 = vst [vmem:[#allocation59_spill] sm:$0xff] %v3047_v4  ;;  %660 = vst.msk [vmem:[#allocation2 + $0x151] sm:$0xff] %vm591_vm2, %v585_v18  ;;  %v698_v30 = vld [vmem:[#allocation2 + $0x128] sm:$0xff]  ;;  %v1510_v40 = vmul.f32 %v2700_v50, %v2694_v47  ;;  %v1511_v23 = vmul.f32 %v2700_v50, %v2711_v55  ;;  %v833_v18 = vmul.f32 %v2644_v1, %v797_v25  ;;  %v696_v52 = vld [vmem:[#allocation2 + $0x110] sm:$0xff] }
 0x126   : > { %v798_v39 = vld [vmem:[#allocation2 + $0x129] sm:$0xff]  ;;  %658 = vst.msk [vmem:[#allocation2 + $0x139] sm:$0xff] %vm591_vm2, %v583_v59  ;;  %v765_v21 = vadd.f32 %v2642_v0, %v733_v62  ;;  %v3062_v44 = vmul.f32 %v2669_v27, %v697_v51  ;;  %v734_v33 = vmul.f32 %v2631_v57, %v698_v30  ;;  %v796_v59 = vld [vmem:[#allocation2 + $0x111] sm:$0xff]  ;;  %661 = vst.msk [vmem:[#allocation2 + $0x159] sm:$0xff] %vm591_vm2, %v586_v35 }
 0x127   : > { %v897_v22 = vld [vmem:[#allocation2 + $0x122] sm:$0xff]  ;;  %v898_v13 = vld [vmem:[#allocation2 + $0x12a] sm:$0xff]  ;;  %v763_v7 = vadd.f32 %v2642_v0, %v731_v54  ;;  %v831_v4 = vmul.f32 %v2644_v1, %v795_v56  ;;  %v3069_v38 = vmul.f32 %v2669_v27, %v695_v48  ;;  %v732_v62 = vmul.f32 %v2631_v57, %v696_v52  ;;  %659 = vst.msk [vmem:[#allocation2 + $0x141] sm:$0xff] %vm591_vm2, %v584_v45  ;;  %v896_v54 = vld [vmem:[#allocation2 + $0x112] sm:$0xff] }
 0x128   : > { %3836 = vst [vmem:[#allocation60_spill] sm:$0xff] %v3062_v44  ;;  %v895_v25 = vld [vmem:[#allocation2 + $0x10a] sm:$0xff]  ;;  %v766_v51 = vadd.f32 %v2642_v0, %v734_v33  ;;  %v834_v44 = vmul.f32 %v2644_v1, %v798_v39  ;;  %v3076_v28 = vmul.f32 %v2648_v8, %v897_v22  ;;  %v3079_v35 = vmul.f32 %v2648_v8, %v898_v13 }
 0x129   : > { %3837 = vst [vmem:[#allocation61_spill] sm:$0xff] %v3069_v38  ;;  %v3081_v56 = vadd.f32 %v833_v18, %v765_v21  ;;  %v3084_v48 = vmul.f32 %v2669_v27, %v698_v30  ;;  %v764_v38 = vadd.f32 %v2642_v0, %v732_v62  ;;  %v832_v45 = vmul.f32 %v2644_v1, %v796_v59 }
 0x12a   : > { %3838 = vst [vmem:[#allocation62_spill] sm:$0xff] %v3076_v28  ;;  %3839 = vst [vmem:[#allocation63_spill] sm:$0xff] %v3079_v35  ;;  %v3088_v33 = vadd.f32 %v831_v4, %v763_v7  ;;  %v3091_v39 = vmul.f32 %v2648_v8, %v895_v25  ;;  %v3093_v22 = vadd.f32 %v1510_v40, %v1442_v24  ;;  %v538_v35 = vpop.f32.mrb[29].mxu0 }
 0x12b   : > { %3840 = vst [vmem:[#allocation64_spill] sm:$0xff] %v3081_v56  ;;  %3841 = vst [vmem:[#allocation65_spill] sm:$0xff] %v3084_v48  ;;  %v589_v13 = vadd.f32 %v2341_v17, %v2637_v63  ;;  %v3097_v21 = vmul.f32 %v2648_v8, %v896_v54  ;;  %v3100_v30 = vmul.f32 %v2669_v27, %v696_v52  ;;  %v2342_v7 = vpop.f32.mrb[30].mxu0 }
 0x12c   : > { %3842 = vst [vmem:[#allocation66_spill] sm:$0xff] %v3088_v33  ;;  %3843 = vst [vmem:[#allocation67_spill] sm:$0xff] %v3091_v39  ;;  %v701_v18 = vld [vmem:[#allocation2 + $0x150] sm:$0xff]  ;;  %v3102_v59 = vadd.f32 %v1511_v23, %v1443_v37  ;;  %v587_v4 = vadd.f32 %v2637_v63, %v538_v35  ;;  %v3105_v25 = vadd.f32 %v834_v44, %v766_v51  ;;  %v541_v54 = vpop.f32.mrb[31].mxu0 }
 0x12d   : > { %3844 = vst [vmem:[#allocation68_spill] sm:$0xff] %v3097_v21  ;;  %v801_v62 = vld [vmem:[#allocation2 + $0x151] sm:$0xff]  ;;  %v3107_v24 = vadd.f32 %v832_v45, %v764_v38  ;;  %v737_v17 = vmul.f32 %v2631_v57, %v701_v18  ;;  %v799_v28 = vld [vmem:[#allocation2 + $0x139] sm:$0xff]  ;;  %664 = vst.msk [vmem:[#allocation2 + $0x181] sm:$0xff] %vm591_vm2, %v589_v13  ;;  %v943_v52 = vadd.f32 %v2747_v16, %v2742_v14 }
 0x12e   : > { %3845 = vst [vmem:[#allocation69_spill] sm:$0xff] %v3105_v25  ;;  %v699_v40 = vld [vmem:[#allocation2 + $0x138] sm:$0xff]  ;;  %v837_v37 = vmul.f32 %v2644_v1, %v801_v62  ;;  %v3115_v23 = vmul.f32 %v2669_v27, %v701_v18  ;;  %662 = vst.msk [vmem:[#allocation2 + $0x169] sm:$0xff] %vm591_vm2, %v587_v4  ;;  %v944_v45 = vadd.f32 %v2754_v20, %v2759_v26  ;;  %v700_v62 = vld [vmem:[#allocation2 + $0x140] sm:$0xff]  ;;  %v3133_v26 = vmul.f32 0.5, %v3102_v59 }
 0x12f   : > { %3846 = vst [vmem:[#allocation70_spill] sm:$0xff] %v3107_v24  ;;  %v735_v44 = vmul.f32 %v2631_v57, %v699_v40  ;;  %v702_v51 = vld [vmem:[#allocation2 + $0x158] sm:$0xff]  ;;  %v769_v13 = vadd.f32 %v2642_v0, %v737_v17  ;;  %v835_v25 = vmul.f32 %v2644_v1, %v799_v28  ;;  %v800_v18 = vld [vmem:[#allocation2 + $0x141] sm:$0xff]  ;;  %v3129_v48 = vmul.f32 %v2669_v27, %v699_v40 }
 0x130   : > { %3847 = vst [vmem:[#allocation71_spill] sm:$0xff] %v3115_v23  ;;  %v802_v38 = vld [vmem:[#allocation2 + $0x159] sm:$0xff]  ;;  %v738_v14 = vmul.f32 %v2631_v57, %v702_v51  ;;  %v3125_v23 = vmul.f32 0.5, %v3093_v22  ;;  %v736_v4 = vmul.f32 %v2631_v57, %v700_v62  ;;  %v3143_v24 = vmul.f32 %v2669_v27, %v702_v51  ;;  %v900_v39 = vld [vmem:[#allocation2 + $0x142] sm:$0xff] }
 0x131   : > { %v901_v35 = vld [vmem:[#allocation2 + $0x152] sm:$0xff]  ;;  %v902_v16 = vld [vmem:[#allocation2 + $0x15a] sm:$0xff]  ;;  %v767_v56 = vadd.f32 %v2642_v0, %v735_v44  ;;  %3848 = vst [vmem:[#allocation72_spill] sm:$0xff] %v3129_v48  ;;  %v838_v28 = vmul.f32 %v2644_v1, %v802_v38  ;;  %v3145_v44 = vadd.f32 %v837_v37, %v769_v13  ;;  %v836_v48 = vmul.f32 %v2644_v1, %v800_v18 }
 0x132   : > { %v899_v20 = vld [vmem:[#allocation2 + $0x13a] sm:$0xff]  ;;  %v3137_v17 = vmul.f32 %v2648_v8, %v901_v35  ;;  %v3140_v21 = vmul.f32 %v2648_v8, %v902_v16  ;;  %v770_v40 = vadd.f32 %v2642_v0, %v738_v14  ;;  %v1606_v35 = vmul.f32 0.044715, %v3093_v22 }
 0x133   : > { %v3150_v33 = vmul.f32 %v2648_v8, %v899_v20  ;;  %v3152_v38 = vadd.f32 %v835_v25, %v767_v56  ;;  %v1607_v16 = vmul.f32 0.044715, %v3102_v59  ;;  %v768_v51 = vadd.f32 %v2642_v0, %v736_v4 }
 0x134   : > { %3849 = vst [vmem:[#allocation73_spill] sm:$0xff] %v3140_v21  ;;  %v590_v21 = vadd.f32 %v2342_v7, %v2637_v63  ;;  %v588_v37 = vadd.f32 %v2637_v63, %v541_v54  ;;  %v1043_v13 = vadd.f32 %v2707_v53, %v943_v52  ;;  %v1044_v14 = vadd.f32 %v2738_v10, %v944_v45 }
 0x135   : > { %v3162_v18 = vmul.f32 %v2648_v8, %v900_v39  ;;  %v1638_v56 = vmul.f32 %v1606_v35, %v3093_v22  ;;  %v1639_v25 = vmul.f32 %v1607_v16, %v3102_v59  ;;  %v703_v20 = vld [vmem:[#allocation2 + $0x168] sm:$0xff]  ;;  %v1111_v7 = vmul.f32 %v2679_v36, %v2674_v31 }
 0x136   : > { %665 = vst.msk [vmem:[#allocation2 + $0x189] sm:$0xff] %vm591_vm2, %v590_v21  ;;  %v3169_v4 = vadd.f32 %v838_v28, %v770_v40  ;;  %v3172_v63 = vmul.f32 %v2669_v27, %v700_v62  ;;  %v739_v53 = vmul.f32 %v2631_v57, %v703_v20  ;;  %663 = vst.msk [vmem:[#allocation2 + $0x171] sm:$0xff] %vm591_vm2, %v588_v37  ;;  %v1003_v21 = vld [vmem:[#allocation2 + $0x180] sm:$0xff]  ;;  %v803_v52 = vld [vmem:[#allocation2 + $0x169] sm:$0xff] }
 0x137   : > { %v1112_v10 = vmul.f32 %v2679_v36, %v2692_v46  ;;  %v1670_v39 = vmul.f32 %v1638_v56, %v3093_v22  ;;  %v1671_v54 = vmul.f32 %v1639_v25, %v3102_v59  ;;  %v1143_v45 = vadd.f32 %v1111_v7, %v1043_v13 }
 0x138   : > { %v1211_v31 = vmul.f32 %v2685_v42, %v2694_v47  ;;  %v3182_v28 = vadd.f32 %v836_v48, %v768_v51  ;;  %v771_v62 = vadd.f32 %v2642_v0, %v739_v53  ;;  %v1212_v35 = vmul.f32 %v2685_v42, %v2711_v55 }
 0x139   : > { %v1144_v40 = vadd.f32 %v1112_v10, %v1044_v14  ;;  %v1702_v46 = vadd.f32 %v1670_v39, %v3093_v22  ;;  %v1703_v16 = vadd.f32 %v1671_v54, %v3102_v59  ;;  %v1312_v56 = vmul.f32 %v2687_v43, %v2762_v29 }
 0x13a   : > { %v1243_v37 = vadd.f32 %v1211_v31, %v1143_v45  ;;  %v3192_v13 = vmul.f32 %v2669_v27, %v1003_v21  ;;  %v839_v47 = vmul.f32 %v2644_v1, %v803_v52  ;;  %v1313_v51 = vmul.f32 %v2687_v43, %v2787_v60 }
 0x13b   : > { %v1244_v48 = vadd.f32 %v1212_v35, %v1144_v40  ;;  %v1734_v14 = vmul.f32 0.7978846, %v1702_v46  ;;  %v1735_v25 = vmul.f32 0.7978846, %v1703_v16  ;;  %v1412_v22 = vmul.f32 %v2698_v49, %v2764_v32 }
 0x13c   : > { %v1344_v55 = vadd.f32 %v1312_v56, %v1243_v37  ;;  %v3199_v59 = vadd.f32 %v839_v47, %v771_v62  ;;  %v3202_v7 = vmul.f32 %v2669_v27, %v703_v20  ;;  %v1413_v10 = vmul.f32 %v2698_v49, %v2789_v2 }
 0x13d   : > { %v1004_v29 = vld [vmem:[#allocation2 + $0x188] sm:$0xff]  ;;  %v1345_v53 = vadd.f32 %v1313_v51, %v1244_v48  ;;  %2391 = vtanh.f32 %v1734_v14  ;;  %v704_v39 = vld [vmem:[#allocation2 + $0x170] sm:$0xff]  ;;  %v1512_v21 = vmul.f32 %v2700_v50, %v2801_v11  ;;  %v1513_v52 = vmul.f32 %v2700_v50, %v2803_v12 }
 0x13e   : > { %v804_v54 = vld [vmem:[#allocation2 + $0x171] sm:$0xff]  ;;  %v1444_v60 = vadd.f32 %v1412_v22, %v1344_v55  ;;  %2393 = vtanh.f32 %v1735_v25  ;;  %v3211_v45 = vmul.f32 %v2669_v27, %v1004_v29  ;;  %v945_v62 = vadd.f32 %v2726_v5, %v2734_v9  ;;  %v1278_v9 = vld [vmem:[#allocation2 + $0x60] sm:$0xff] }
 0x13f   : > { %v903_v20 = vld [vmem:[#allocation2 + $0x16a] sm:$0xff]  ;;  %v904_v31 = vld [vmem:[#allocation2 + $0x172] sm:$0xff]  ;;  %v946_v40 = vadd.f32 %v2730_v6, %v2750_v19  ;;  %v740_v35 = vmul.f32 %v2631_v57, %v704_v39  ;;  %v1445_v46 = vadd.f32 %v1413_v10, %v1345_v53  ;;  %v1113_v37 = vmul.f32 %v2679_v36, %v2764_v32  ;;  %v1378_v32 = vld [vmem:[#allocation2 + $0x61] sm:$0xff] }
 0x140   : > { %v1544_v16 = vadd.f32 %v1512_v21, %v1444_v60  ;;  %v3221_v56 = vmul.f32 %v2644_v1, %v804_v54  ;;  %v1045_v47 = vadd.f32 %v2797_v3, %v945_v62  ;;  %v1114_v5 = vmul.f32 %v2679_v36, %v2789_v2  ;;  %v1478_v25 = vld [vmem:[#allocation2 + $0x62] sm:$0xff]  ;;  %v1479_v29 = vld [vmem:[#allocation2 + $0x6a] sm:$0xff] }
 0x141   : > { %v1046_v48 = vadd.f32 %v2839_v58, %v946_v40  ;;  %v3228_v6 = vmul.f32 %v2648_v8, %v903_v20  ;;  %v3231_v57 = vmul.f32 %v2648_v8, %v904_v31  ;;  %v1545_v19 = vadd.f32 %v1513_v52, %v1445_v46  ;;  %v3850_v31 = vld [vmem:[#allocation9_spill] sm:$0xff]  ;;  %v3851_v62 = vld [vmem:[#allocation10_spill] sm:$0xff] }
 0x142   : > { %v1608_v51 = vmul.f32 0.044715, %v1544_v16  ;;  %v1145_v14 = vadd.f32 %v1113_v37, %v1045_v47  ;;  %v1213_v3 = vmul.f32 %v2685_v42, %v2801_v11  ;;  %v1214_v58 = vmul.f32 %v2685_v42, %v2803_v12 }
 0x143   : > { %v1146_v1 = vadd.f32 %v1114_v5, %v1046_v48  ;;  %v3238_v2 = vmul.f32 %v2669_v27, %v704_v39  ;;  %v1609_v55 = vmul.f32 0.044715, %v1545_v19  ;;  %v1314_v8 = vmul.f32 %v2687_v43, %v1278_v9  ;;  %v3853_v48 = vld [vmem:[#allocation11_spill] sm:$0xff] }
 0x144   : > { %v1640_v22 = vmul.f32 %v1608_v51, %v1544_v16  ;;  %v1245_v53 = vadd.f32 %v1213_v3, %v1145_v14  ;;  %v1315_v54 = vmul.f32 %v2687_v43, %v2771_v41  ;;  %v1414_v60 = vmul.f32 %v2698_v49, %v1378_v32  ;;  %v3852_v41 = vld [vmem:[#allocation14_spill] sm:$0xff]  ;;  %v3854_v9 = vld [vmem:[#allocation3_spill] sm:$0xff] }
 0x145   : > { %v1246_v10 = vadd.f32 %v1214_v58, %v1146_v1  ;;  %v1641_v11 = vmul.f32 %v1609_v55, %v1545_v19  ;;  %v1415_v12 = vmul.f32 %v2698_v49, %v2773_v34  ;;  %v1514_v27 = vmul.f32 %v2700_v50, %v1478_v25  ;;  %v3855_v58 = vld [vmem:[#allocation4_spill] sm:$0xff] }
 0x146   : > { %v1672_v21 = vmul.f32 %v1640_v22, %v1544_v16  ;;  %v1346_v39 = vadd.f32 %v1314_v8, %v1245_v53  ;;  %v1515_v20 = vmul.f32 %v2700_v50, %v1479_v29  ;;  %v947_v40 = vadd.f32 %v3851_v62, %v3850_v31 }
 0x147   : > { %v1347_v52 = vadd.f32 %v1315_v54, %v1246_v10  ;;  %v2392_v46 = vpop.eup %2391  ;;  %v1673_v37 = vmul.f32 %v1641_v11, %v1545_v19  ;;  %v948_v5 = vadd.f32 %v3853_v48, %v3852_v41  ;;  %v1115_v51 = vmul.f32 %v2679_v36, %v3854_v9  ;;  %v3856_v10 = vld [vmem:[#allocation8_spill] sm:$0xff] }
 0x148   : > { %v1704_v47 = vadd.f32 %v1672_v21, %v1544_v16  ;;  %v2394_v32 = vpop.eup %2393  ;;  %v1798_v14 = vadd.f32 1.0, %v2392_v46  ;;  %v1446_v1 = vadd.f32 %v1414_v60, %v1346_v39  ;;  %v1047_v55 = vadd.f32 %v3855_v58, %v947_v40  ;;  %v1280_v39 = vld [vmem:[#allocation2 + $0x78] sm:$0xff]  ;;  %v3859_v58 = vld [vmem:[#allocation5_spill] sm:$0xff] }
 0x149   : > { %v1447_v3 = vadd.f32 %v1415_v12, %v1347_v52  ;;  %v1799_v22 = vadd.f32 1.0, %v2394_v32  ;;  %v1705_v8 = vadd.f32 %v1673_v37, %v1545_v19  ;;  %v1048_v54 = vadd.f32 %v3856_v10, %v948_v5 }
 0x14a   : > { %v1736_v53 = vmul.f32 0.7978846, %v1704_v47  ;;  %v1830_v11 = vmul.f32 %v1798_v14, %v3125_v23  ;;  %v3257_v21 = vadd.f32 %v1514_v27, %v1446_v1  ;;  %v1116_v62 = vmul.f32 %v2679_v36, %v2773_v34 }
 0x14b   : > { %v3259_v31 = vadd.f32 %v1515_v20, %v1447_v3  ;;  %v1831_v46 = vmul.f32 %v1799_v22, %v3133_v26  ;;  %v1737_v60 = vmul.f32 0.7978846, %v1705_v8  ;;  %v1147_v12 = vadd.f32 %v1115_v51, %v1047_v55  ;;  %v1380_v20 = vld [vmem:[#allocation2 + $0x79] sm:$0xff]  ;;  %v3858_v3 = vld [vmem:[#allocation7_spill] sm:$0xff]  ;;  %v3861_v8 = vld [vmem:[#allocation6_spill] sm:$0xff] }
 0x14c   : > { %2395 = vtanh.f32 %v1736_v53  ;;  %v3265_v52 = vadd.f32 %v2642_v0, %v740_v35  ;;  %v3267_v40 = vmul.f32 0.5, %v1544_v16  ;;  %v1610_v23 = vmul.f32 0.044715, %v3257_v21  ;;  %v3860_v22 = vld [vmem:[#allocation12_spill] sm:$0xff] }
 0x14d   : > { %v1611_v27 = vmul.f32 0.044715, %v3259_v31  ;;  %v1862_v37 = vpack.c.bf16 %v1831_v46, %v1830_v11  ;;  %2397 = vtanh.f32 %v1737_v60  ;;  %v1148_v47 = vadd.f32 %v1116_v62, %v1048_v54  ;;  %v3862_v11 = vld [vmem:[#allocation15_spill] sm:$0xff]  ;;  %v1181_v46 = vld [vmem:[#allocation2 + $0x7a] sm:$0xff] }
 0x14e   : > { %v1215_v34 = vmul.f32 %v1478_v25, %v2685_v42  ;;  %v1577_v26 = vmul.f32 0.5, %v1545_v19  ;;  %v1642_v41 = vmul.f32 %v1610_v23, %v3257_v21  ;;  %v1216_v0 = vmul.f32 %v1479_v29, %v2685_v42  ;;  %v3857_v29 = vld [vmem:[#allocation19_spill] sm:$0xff]  ;;  %v3864_v23 = vld [vmem:[#allocation29_spill] sm:$0xff] }
 0x14f   : > { %v1643_v48 = vmul.f32 %v1611_v27, %v3259_v31  ;;  %2347 = vmatprep.mubr.msk.bf16.mxu1 %vm591_vm2, %v1862_v37  ;;  %v1316_v16 = vmul.f32 %v2687_v43, %v1280_v39  ;;  %v1317_v5 = vmul.f32 %v2687_v43, %v2867_v61  ;;  %v1416_v9 = vmul.f32 %v2698_v49, %v1380_v20  ;;  %v1182_v37 = vld [vmem:[#allocation2 + $0x82] sm:$0xff] }
 0x150   : > { %v1247_v35 = vadd.f32 %v1215_v34, %v1147_v12  ;;  %v1674_v51 = vmul.f32 %v1642_v41, %v3257_v21  ;;  %v1248_v25 = vadd.f32 %v1216_v0, %v1148_v47  ;;  %v1417_v32 = vmul.f32 %v2698_v49, %v2869_v15  ;;  %v3863_v12 = vld [vmem:[#allocation18_spill] sm:$0xff] }
 0x151   : > { %v1675_v19 = vmul.f32 %v1643_v48, %v3259_v31  ;;  %v1516_v1 = vmul.f32 %v2700_v50, %v3857_v29  ;;  %v949_v55 = vadd.f32 %v3859_v58, %v3858_v3  ;;  %v950_v61 = vadd.f32 %v3861_v8, %v3860_v22  ;;  %v3865_v48 = vld [vmem:[#allocation20_spill] sm:$0xff] }
 0x152   : > { %v1348_v14 = vadd.f32 %v1316_v16, %v1247_v35  ;;  %v1706_v53 = vadd.f32 %v1674_v51, %v3257_v21  ;;  %v1349_v54 = vadd.f32 %v1317_v5, %v1248_v25  ;;  %v1117_v62 = vmul.f32 %v2679_v36, %v3862_v11  ;;  %v1282_v35 = vld [vmem:[#allocation2 + $0x90] sm:$0xff]  ;;  %v1383_v8 = vld [vmem:[#allocation2 + $0x99] sm:$0xff] }
 0x153   : > { %v1707_v10 = vadd.f32 %v1675_v19, %v3259_v31  ;;  %v1049_v39 = vadd.f32 %v3863_v12, %v949_v55  ;;  %v1050_v27 = vadd.f32 %v3864_v23, %v950_v61  ;;  %v1118_v20 = vmul.f32 %v2679_v36, %v2869_v15  ;;  %v1283_v15 = vld [vmem:[#allocation2 + $0x98] sm:$0xff] }
 0x154   : > { %v1448_v60 = vadd.f32 %v1416_v9, %v1348_v14  ;;  %v1738_v47 = vmul.f32 0.7978846, %v1706_v53  ;;  %v1449_v41 = vadd.f32 %v1417_v32, %v1349_v54  ;;  %v1517_v0 = vmul.f32 %v2700_v50, %v3865_v48  ;;  %v1382_v22 = vld [vmem:[#allocation2 + $0x91] sm:$0xff] }
 0x155   : > { %v1739_v34 = vmul.f32 0.7978846, %v1707_v10  ;;  %v1149_v51 = vadd.f32 %v1117_v62, %v1049_v39  ;;  %v1150_v19 = vadd.f32 %v1118_v20, %v1050_v27  ;;  %v1217_v9 = vmul.f32 %v2685_v42, %v1181_v46  ;;  %v1482_v54 = vld [vmem:[#allocation2 + $0x92] sm:$0xff]  ;;  %v1483_v20 = vld [vmem:[#allocation2 + $0x9a] sm:$0xff] }
 0x156   : > { %v2396_v16 = vpop.eup %2395  ;;  %v1548_v5 = vadd.f32 %v1516_v1, %v1448_v60  ;;  %2399 = vtanh.f32 %v1738_v47  ;;  %v1549_v14 = vadd.f32 %v1517_v0, %v1449_v41  ;;  %v1218_v29 = vmul.f32 %v2685_v42, %v1182_v37  ;;  %v3866_v0 = vld [vmem:[#allocation25_spill] sm:$0xff] }
 0x157   : > { %v1800_v25 = vadd.f32 1.0, %v2396_v16  ;;  %v2398_v3 = vpop.eup %2397  ;;  %2401 = vtanh.f32 %v1739_v34  ;;  %v1249_v32 = vadd.f32 %v1217_v9, %v1149_v51  ;;  %v1318_v55 = vmul.f32 %v2687_v43, %v1282_v35  ;;  %v3867_v35 = vld [vmem:[#allocation26_spill] sm:$0xff]  ;;  %v3869_v9 = vld [vmem:[#allocation27_spill] sm:$0xff] }
 0x158   : > { %v1612_v58 = vmul.f32 0.044715, %v1548_v5  ;;  %v1801_v61 = vadd.f32 1.0, %v2398_v3  ;;  %v1578_v1 = vmul.f32 0.5, %v3257_v21  ;;  %v1579_v53 = vmul.f32 0.5, %v3259_v31  ;;  %v3870_v3 = vld [vmem:[#allocation17_spill] sm:$0xff] }
 0x159   : > { %v1613_v10 = vmul.f32 0.044715, %v1549_v14  ;;  %v1250_v62 = vadd.f32 %v1218_v29, %v1150_v19  ;;  %v1319_v46 = vmul.f32 %v2687_v43, %v1283_v15  ;;  %v1350_v60 = vadd.f32 %v1318_v55, %v1249_v32  ;;  %v3871_v32 = vld [vmem:[#allocation13_spill] sm:$0xff] }
 0x15a   : > { %v1644_v11 = vmul.f32 %v1612_v58, %v1548_v5  ;;  %v1832_v12 = vmul.f32 %v1800_v25, %v3267_v40  ;;  %v1833_v39 = vmul.f32 %v1801_v61, %v1577_v26  ;;  %v1418_v27 = vmul.f32 %v2698_v49, %v1382_v22  ;;  %v3868_v26 = vld [vmem:[#allocation30_spill] sm:$0xff] }
 0x15b   : > { %v1645_v23 = vmul.f32 %v1613_v10, %v1549_v14  ;;  %v1351_v47 = vadd.f32 %v1319_v46, %v1250_v62  ;;  %v1419_v21 = vmul.f32 %v2698_v49, %v1383_v8  ;;  %v1518_v31 = vmul.f32 %v2700_v50, %v1482_v54  ;;  %v3872_v10 = vld [vmem:[#allocation24_spill] sm:$0xff] }
 0x15c   : > { %v1676_v37 = vmul.f32 %v1644_v11, %v1548_v5  ;;  %v1863_v34 = vpack.c.bf16 %v1833_v39, %v1832_v12  ;;  %v1450_v48 = vadd.f32 %v1418_v27, %v1350_v60  ;;  %v951_v16 = vadd.f32 %v3867_v35, %v3866_v0  ;;  %v3873_v12 = vld [vmem:[#allocation16_spill] sm:$0xff]  ;;  %v1384_v0 = vld [vmem:[#allocation2 + $0xa9] sm:$0xff] }
 0x15d   : > { %v1677_v41 = vmul.f32 %v1645_v23, %v1549_v14  ;;  %v1451_v19 = vadd.f32 %v1419_v21, %v1351_v47  ;;  %v1519_v40 = vmul.f32 %v2700_v50, %v1483_v20  ;;  %v952_v25 = vadd.f32 %v3869_v9, %v3868_v26  ;;  %v1284_v21 = vld [vmem:[#allocation2 + $0xa8] sm:$0xff] }
 0x15e   : > { %v1708_v51 = vadd.f32 %v1676_v37, %v1548_v5  ;;  %2348 = vmatmul.mubr.msk.bf16.vlgmr.msra.gmra.mrb[0].mxu1 %vm591_vm2, %v1863_v34  ;;  %v3316_v15 = vadd.f32 %v1518_v31, %v1450_v48  ;;  %v1051_v58 = vadd.f32 %v3870_v3, %v951_v16  ;;  %v1119_v55 = vmul.f32 %v2679_v36, %v3871_v32  ;;  %v1285_v48 = vld [vmem:[#allocation2 + $0xb0] sm:$0xff] }
 0x15f   : > { %v1709_v29 = vadd.f32 %v1677_v41, %v1549_v14  ;;  %v3321_v22 = vmul.f32 0.5, %v1548_v5  ;;  %v3323_v61 = vadd.f32 %v1519_v40, %v1451_v19  ;;  %v1052_v11 = vadd.f32 %v3872_v10, %v952_v25  ;;  %v1385_v40 = vld [vmem:[#allocation2 + $0xb1] sm:$0xff] }
 0x160   : > { %v1740_v8 = vmul.f32 0.7978846, %v1708_v51  ;;  %v2400_v62 = vpop.eup %2399  ;;  %v1614_v60 = vmul.f32 0.044715, %v3316_v15  ;;  %v1120_v39 = vmul.f32 %v2679_v36, %v3873_v12  ;;  %v1151_v23 = vadd.f32 %v1119_v55, %v1051_v58  ;;  %v1485_v55 = vld [vmem:[#allocation2 + $0xb2] sm:$0xff] }
 0x161   : > { %v1741_v46 = vmul.f32 0.7978846, %v1709_v29  ;;  %v2402_v27 = vpop.eup %2401  ;;  %v1802_v37 = vadd.f32 1.0, %v2400_v62  ;;  %v1615_v47 = vmul.f32 0.044715, %v3323_v61  ;;  %v1219_v5 = vmul.f32 %v1482_v54, %v2685_v42  ;;  %v1484_v29 = vld [vmem:[#allocation2 + $0xaa] sm:$0xff] }
 0x162   : > { %2403 = vtanh.f32 %v1740_v8  ;;  %v1803_v31 = vadd.f32 1.0, %v2402_v27  ;;  %v1646_v34 = vmul.f32 %v1614_v60, %v3316_v15  ;;  %v1152_v41 = vadd.f32 %v1120_v39, %v1052_v11  ;;  %v3875_v60 = vld [vmem:[#allocation21_spill] sm:$0xff] }
 0x163   : > { %2405 = vtanh.f32 %v1741_v46  ;;  %v1581_v35 = vmul.f32 0.5, %v1549_v14  ;;  %v1647_v16 = vmul.f32 %v1615_v47, %v3323_v61  ;;  %v1220_v51 = vmul.f32 %v1483_v20, %v2685_v42  ;;  %v3874_v46 = vld [vmem:[#allocation23_spill] sm:$0xff]  ;;  %v3877_v47 = vld [vmem:[#allocation22_spill] sm:$0xff] }
 0x164   : > { %v1251_v19 = vadd.f32 %v1219_v5, %v1151_v23  ;;  %v1834_v26 = vmul.f32 %v1802_v37, %v1578_v1  ;;  %v1835_v9 = vmul.f32 %v1803_v31, %v1579_v53  ;;  %v1678_v25 = vmul.f32 %v1646_v34, %v3316_v15  ;;  %v3876_v37 = vld [vmem:[#allocation28_spill] sm:$0xff]  ;;  %v3878_v34 = vld [vmem:[#allocation35_spill] sm:$0xff] }
 0x165   : > { %v1320_v54 = vmul.f32 %v2687_v43, %v1284_v21  ;;  %v1679_v3 = vmul.f32 %v1647_v16, %v3323_v61  ;;  %v1252_v58 = vadd.f32 %v1220_v51, %v1152_v41  ;;  %v1321_v32 = vmul.f32 %v2687_v43, %v1285_v48  ;;  %v3879_v48 = vld [vmem:[#allocation31_spill] sm:$0xff]  ;;  %v3880_v51 = vld [vmem:[#allocation44_spill] sm:$0xff] }
 0x166   : > { %v1420_v14 = vmul.f32 %v2698_v49, %v1384_v0  ;;  %v1864_v8 = vpack.c.bf16 %v1835_v9, %v1834_v26  ;;  %v1710_v20 = vadd.f32 %v1678_v25, %v3316_v15  ;;  %v1421_v1 = vmul.f32 %v2698_v49, %v1385_v40  ;;  %v3881_v40 = vld [vmem:[#allocation34_spill] sm:$0xff] }
 0x167   : > { %v1352_v10 = vadd.f32 %v1320_v54, %v1251_v19  ;;  %v1711_v53 = vadd.f32 %v1679_v3, %v3323_v61  ;;  %v1353_v11 = vadd.f32 %v1321_v32, %v1252_v58  ;;  %v1520_v62 = vmul.f32 %v2700_v50, %v1484_v29  ;;  %v1286_v58 = vld [vmem:[#allocation2 + $0xc0] sm:$0xff] }
 0x168   : > { %v953_v12 = vadd.f32 %v3875_v60, %v3874_v46  ;;  %2351 = vmatprep.mubr.msk.bf16.mxu1 %vm591_vm2, %v1864_v8  ;;  %v1742_v39 = vmul.f32 0.7978846, %v1710_v20  ;;  %v1521_v27 = vmul.f32 %v2700_v50, %v1485_v55  ;;  %v954_v5 = vadd.f32 %v3877_v47, %v3876_v37  ;;  %v1386_v60 = vld [vmem:[#allocation2 + $0xc1] sm:$0xff] }
 0x169   : > { %v1452_v23 = vadd.f32 %v1420_v14, %v1352_v10  ;;  %v1743_v21 = vmul.f32 0.7978846, %v1711_v53  ;;  %v1453_v31 = vadd.f32 %v1421_v1, %v1353_v11  ;;  %v1121_v0 = vmul.f32 %v2679_v36, %v3879_v48  ;;  %v1287_v1 = vld [vmem:[#allocation2 + $0xc8] sm:$0xff] }
 0x16a   : > { %v1053_v41 = vadd.f32 %v3878_v34, %v953_v12  ;;  %2407 = vtanh.f32 %v1742_v39  ;;  %v1054_v19 = vadd.f32 %v3880_v51, %v954_v5  ;;  %v1122_v26 = vmul.f32 %v2679_v36, %v3881_v40  ;;  %v1387_v12 = vld [vmem:[#allocation2 + $0xc9] sm:$0xff] }
 0x16b   : > { %v1552_v16 = vadd.f32 %v1520_v62, %v1452_v23  ;;  %2409 = vtanh.f32 %v1743_v21  ;;  %v3355_v25 = vadd.f32 %v1521_v27, %v1453_v31  ;;  %v1221_v3 = vmul.f32 %v1484_v29, %v2685_v42  ;;  %v1486_v37 = vld [vmem:[#allocation2 + $0xc2] sm:$0xff]  ;;  %v1487_v48 = vld [vmem:[#allocation2 + $0xca] sm:$0xff] }
 0x16c   : > { %v2404_v9 = vpop.eup %2403  ;;  %v1153_v54 = vadd.f32 %v1121_v0, %v1053_v41  ;;  %v1154_v20 = vadd.f32 %v1122_v26, %v1054_v19  ;;  %v1222_v10 = vmul.f32 %v1485_v55, %v2685_v42  ;;  %v1582_v11 = vmul.f32 0.5, %v3316_v15  ;;  %v3883_v26 = vld [vmem:[#allocation41_spill] sm:$0xff] }
 0x16d   : > { %v2406_v32 = vpop.eup %2405  ;;  %v1804_v14 = vadd.f32 1.0, %v2404_v9  ;;  %v1616_v8 = vmul.f32 0.044715, %v1552_v16  ;;  %v1617_v62 = vmul.f32 0.044715, %v3355_v25  ;;  %v1583_v39 = vmul.f32 0.5, %v3323_v61 }
 0x16e   : > { %v1805_v53 = vadd.f32 1.0, %v2406_v32  ;;  %v1253_v46 = vadd.f32 %v1221_v3, %v1153_v54  ;;  %v1254_v29 = vadd.f32 %v1222_v10, %v1154_v20  ;;  %v1322_v27 = vmul.f32 %v2687_v43, %v1286_v58  ;;  %v3884_v54 = vld [vmem:[#allocation45_spill] sm:$0xff]  ;;  %v3885_v3 = vld [vmem:[#allocation42_spill] sm:$0xff] }
 0x16f   : > { %v1648_v23 = vmul.f32 %v1616_v8, %v1552_v16  ;;  %v1836_v47 = vmul.f32 %v1804_v14, %v3321_v22  ;;  %v1649_v55 = vmul.f32 %v1617_v62, %v3355_v25  ;;  %v1323_v21 = vmul.f32 %v2687_v43, %v1287_v1  ;;  %v3886_v62 = vld [vmem:[#allocation33_spill] sm:$0xff] }
 0x170   : > { %v1837_v5 = vmul.f32 %v1805_v53, %v1581_v35  ;;  %v1354_v31 = vadd.f32 %v1322_v27, %v1253_v46  ;;  %v1422_v34 = vmul.f32 %v2698_v49, %v1386_v60  ;;  %v1423_v41 = vmul.f32 %v2698_v49, %v1387_v12  ;;  %v3882_v35 = vld [vmem:[#allocation40_spill] sm:$0xff]  ;;  %v3887_v60 = vld [vmem:[#allocation39_spill] sm:$0xff] }
 0x171   : > { %v1680_v15 = vmul.f32 %v1648_v23, %v1552_v16  ;;  %v1681_v0 = vmul.f32 %v1649_v55, %v3355_v25  ;;  %v1355_v51 = vadd.f32 %v1323_v21, %v1254_v29  ;;  %v1522_v19 = vmul.f32 %v2700_v50, %v1486_v37 }
 0x172   : > { %v1865_v61 = vpack.c.bf16 %v1837_v5, %v1836_v47  ;;  %v1454_v22 = vadd.f32 %v1422_v34, %v1354_v31  ;;  %v955_v9 = vadd.f32 %v3883_v26, %v3882_v35  ;;  %v956_v58 = vadd.f32 %v3885_v3, %v3884_v54  ;;  %v1288_v34 = vld [vmem:[#allocation2 + $0xd8] sm:$0xff] }
 0x173   : > { %v1712_v40 = vadd.f32 %v1680_v15, %v1552_v16  ;;  %v3375_v32 = vmul.f32 0.5, %v1552_v16  ;;  %v1713_v14 = vadd.f32 %v1681_v0, %v3355_v25  ;;  %v1455_v8 = vadd.f32 %v1423_v41, %v1355_v51  ;;  %v2455_v16 = vld [vmem:[#allocation2 + $0xc1] sm:$0xff]  ;;  %v3888_v15 = vld [vmem:[#allocation32_spill] sm:$0xff] }
 0x174   : > { %2352 = vmatmul.mubr.msk.bf16.gmra.mrb[4].mxu1 %vm591_vm2, %v1865_v61  ;;  %v1523_v20 = vmul.f32 %v2700_v50, %v1487_v48  ;;  %v2408_v10 = vpop.eup %2407  ;;  %v3379_v53 = vadd.f32 %v1522_v19, %v1454_v22  ;;  %v1055_v46 = vadd.f32 %v3886_v62, %v955_v9  ;;  %v1056_v12 = vadd.f32 %v3887_v60, %v956_v58  ;;  %v1289_v41 = vld [vmem:[#allocation2 + $0xe0] sm:$0xff] }
 0x175   : > { %v1744_v1 = vmul.f32 0.7978846, %v1712_v40  ;;  %v2410_v23 = vpop.eup %2409  ;;  %v1806_v29 = vadd.f32 1.0, %v2408_v10  ;;  %v1745_v27 = vmul.f32 0.7978846, %v1713_v14  ;;  %v1123_v5 = vmul.f32 %v2455_v16, %v2679_v36  ;;  %v1388_v19 = vld [vmem:[#allocation2 + $0xd9] sm:$0xff] }
 0x176   : > { %v3383_v47 = vadd.f32 %v1523_v20, %v1455_v8  ;;  %v1807_v55 = vadd.f32 1.0, %v2410_v23  ;;  %v1618_v21 = vmul.f32 0.044715, %v3379_v53  ;;  %v1124_v31 = vmul.f32 %v2679_v36, %v3888_v15  ;;  %v1389_v9 = vld [vmem:[#allocation2 + $0xe1] sm:$0xff] }
 0x177   : > { %2411 = vtanh.f32 %v1744_v1  ;;  %v1838_v61 = vmul.f32 %v1806_v29, %v1582_v11  ;;  %v1223_v51 = vmul.f32 %v1486_v37, %v2685_v42  ;;  %v1155_v35 = vadd.f32 %v1123_v5, %v1055_v46  ;;  %v1488_v54 = vld [vmem:[#allocation2 + $0xda] sm:$0xff]  ;;  %v1489_v8 = vld [vmem:[#allocation2 + $0xe2] sm:$0xff] }
 0x178   : > { %2413 = vtanh.f32 %v1745_v27  ;;  %v1619_v0 = vmul.f32 0.044715, %v3383_v47  ;;  %v1839_v40 = vmul.f32 %v1807_v55, %v1583_v39  ;;  %v1650_v22 = vmul.f32 %v1618_v21, %v3379_v53  ;;  %v3889_v29 = vld [vmem:[#allocation38_spill] sm:$0xff]  ;;  %v3890_v27 = vld [vmem:[#allocation36_spill] sm:$0xff]  ;;  %v3891_v21 = vld [vmem:[#allocation43_spill] sm:$0xff] }
 0x179   : > { %v1156_v26 = vadd.f32 %v1124_v31, %v1056_v12  ;;  %v1224_v58 = vmul.f32 %v1487_v48, %v2685_v42  ;;  %v1324_v14 = vmul.f32 %v2687_v43, %v1288_v34  ;;  %v1325_v11 = vmul.f32 %v2687_v43, %v1289_v41  ;;  %v3892_v15 = vld [vmem:[#allocation37_spill] sm:$0xff]  ;;  %v3893_v34 = vld [vmem:[#allocation46_spill] sm:$0xff] }
 0x17a   : > { %v1651_v3 = vmul.f32 %v1619_v0, %v3383_v47  ;;  %v1866_v20 = vpack.c.bf16 %v1839_v40, %v1838_v61  ;;  %v1682_v37 = vmul.f32 %v1650_v22, %v3379_v53  ;;  %v1255_v10 = vadd.f32 %v1223_v51, %v1155_v35  ;;  %v3894_v51 = vld [vmem:[#allocation49_spill] sm:$0xff]  ;;  %v3895_v40 = vld [vmem:[#allocation48_spill] sm:$0xff] }
 0x17b   : > { %v1424_v39 = vmul.f32 %v2698_v49, %v1388_v19  ;;  %v1256_v62 = vadd.f32 %v1224_v58, %v1156_v26  ;;  %v1425_v46 = vmul.f32 %v2698_v49, %v1389_v9  ;;  %v1524_v60 = vmul.f32 %v2700_v50, %v1488_v54  ;;  %v3896_v9 = vld [vmem:[#allocation58_spill] sm:$0xff] }
 0x17c   : > { %v1683_v1 = vmul.f32 %v1651_v3, %v3383_v47  ;;  %2355 = vmatprep.mubr.msk.bf16.mxu1 %vm591_vm2, %v1866_v20  ;;  %v1714_v48 = vadd.f32 %v1682_v37, %v3379_v53  ;;  %v1356_v12 = vadd.f32 %v1324_v14, %v1255_v10  ;;  %v1525_v23 = vmul.f32 %v2700_v50, %v1489_v8 }
 0x17d   : > { %v957_v16 = vadd.f32 %v3890_v27, %v3889_v29  ;;  %v1357_v55 = vadd.f32 %v1325_v11, %v1256_v62  ;;  %v958_v31 = vadd.f32 %v3892_v15, %v3891_v21  ;;  %v1125_v41 = vmul.f32 %v2679_v36, %v3893_v34 }
 0x17e   : > { %v1715_v5 = vadd.f32 %v1683_v1, %v3383_v47  ;;  %v1746_v61 = vmul.f32 0.7978846, %v1714_v48  ;;  %v1456_v0 = vadd.f32 %v1424_v39, %v1356_v12  ;;  %v1126_v22 = vmul.f32 %v2679_v36, %v3895_v40  ;;  %v1290_v48 = vld [vmem:[#allocation2 + $0xf0] sm:$0xff]  ;;  %v1291_v12 = vld [vmem:[#allocation2 + $0xf8] sm:$0xff] }
 0x17f   : > { %v1057_v19 = vadd.f32 %v3894_v51, %v957_v16  ;;  %v1457_v26 = vadd.f32 %v1425_v46, %v1357_v55  ;;  %v1058_v3 = vadd.f32 %v3896_v9, %v958_v31  ;;  %v1225_v58 = vmul.f32 %v1488_v54, %v2685_v42  ;;  %v1390_v54 = vld [vmem:[#allocation2 + $0xf1] sm:$0xff]  ;;  %v1491_v51 = vld [vmem:[#allocation2 + $0xfa] sm:$0xff]  ;;  %v3897_v9 = vld [vmem:[#allocation54_spill] sm:$0xff] }
 0x180   : > { %v1747_v35 = vmul.f32 0.7978846, %v1715_v5  ;;  %2415 = vtanh.f32 %v1746_v61  ;;  %v1556_v11 = vadd.f32 %v1524_v60, %v1456_v0  ;;  %v1226_v37 = vmul.f32 %v1489_v8, %v2685_v42  ;;  %v1391_v5 = vld [vmem:[#allocation2 + $0xf9] sm:$0xff] }
 0x181   : > { %v2412_v14 = vpop.eup %2411  ;;  %v1157_v20 = vadd.f32 %v1125_v41, %v1057_v19  ;;  %v3417_v39 = vadd.f32 %v1525_v23, %v1457_v26  ;;  %v1158_v62 = vadd.f32 %v1126_v22, %v1058_v3  ;;  %v1585_v46 = vmul.f32 0.5, %v3355_v25  ;;  %v1490_v41 = vld [vmem:[#allocation2 + $0xf2] sm:$0xff] }
 0x182   : > { %v2414_v10 = vpop.eup %2413  ;;  %v1808_v1 = vadd.f32 1.0, %v2412_v14  ;;  %2417 = vtanh.f32 %v1747_v35  ;;  %v1620_v27 = vmul.f32 0.044715, %v1556_v11  ;;  %v1586_v55 = vmul.f32 0.5, %v3379_v53  ;;  %v3898_v3 = vld [vmem:[#allocation55_spill] sm:$0xff] }
 0x183   : > { %v1809_v29 = vadd.f32 1.0, %v2414_v10  ;;  %v1257_v16 = vadd.f32 %v1225_v58, %v1157_v20  ;;  %v1621_v8 = vmul.f32 0.044715, %v3417_v39  ;;  %v1258_v21 = vadd.f32 %v1226_v37, %v1158_v62  ;;  %v3899_v14 = vld [vmem:[#allocation59_spill] sm:$0xff] }
 0x184   : > { %v1840_v60 = vmul.f32 %v1808_v1, %v3375_v32  ;;  %v1652_v23 = vmul.f32 %v1620_v27, %v1556_v11  ;;  %v1326_v31 = vmul.f32 %v2687_v43, %v1290_v48  ;;  %v1327_v34 = vmul.f32 %v2687_v43, %v1291_v12  ;;  %v3901_v12 = vld [vmem:[#allocation47_spill] sm:$0xff] }
 0x185   : > { %v1841_v15 = vmul.f32 %v1809_v29, %v1585_v46  ;;  %v1587_v25 = vmul.f32 0.5, %v3383_v47  ;;  %v1653_v61 = vmul.f32 %v1621_v8, %v3417_v39  ;;  %v1426_v0 = vmul.f32 %v2698_v49, %v1390_v54  ;;  %v3900_v47 = vld [vmem:[#allocation56_spill] sm:$0xff]  ;;  %v3902_v29 = vld [vmem:[#allocation53_spill] sm:$0xff] }
 0x186   : > { %v1427_v32 = vmul.f32 %v2698_v49, %v1391_v5  ;;  %v1684_v19 = vmul.f32 %v1652_v23, %v1556_v11  ;;  %v1358_v40 = vadd.f32 %v1326_v31, %v1257_v16  ;;  %v1359_v22 = vadd.f32 %v1327_v34, %v1258_v21  ;;  %v2456_v16 = vld [vmem:[#allocation2 + $0xf1] sm:$0xff] }
 0x187   : > { %v1867_v53 = vpack.c.bf16 %v1841_v15, %v1840_v60  ;;  %v1685_v35 = vmul.f32 %v1653_v61, %v3417_v39  ;;  %v1526_v26 = vmul.f32 %v2700_v50, %v1490_v41  ;;  %v959_v58 = vadd.f32 %v3898_v3, %v3897_v9  ;;  %v2457_v15 = vld [vmem:[#allocation2 + $0xf9] sm:$0xff] }
 0x188   : > { %v960_v20 = vadd.f32 %v3900_v47, %v3899_v14  ;;  %v1716_v37 = vadd.f32 %v1684_v19, %v1556_v11  ;;  %v1458_v10 = vadd.f32 %v1426_v0, %v1358_v40  ;;  %v1459_v1 = vadd.f32 %v1427_v32, %v1359_v22 }
 0x189   : > { %2356 = vmatmul.mubr.msk.bf16.gmra.mrb[8].mxu1 %vm591_vm2, %v1867_v53  ;;  %v1527_v62 = vmul.f32 %v2700_v50, %v1491_v51  ;;  %v1717_v48 = vadd.f32 %v1685_v35, %v3417_v39  ;;  %v1059_v46 = vadd.f32 %v3901_v12, %v959_v58  ;;  %v1127_v54 = vmul.f32 %v2456_v16, %v2679_v36  ;;  %v1292_v53 = vld [vmem:[#allocation2 + $0x108] sm:$0xff]  ;;  %v1293_v35 = vld [vmem:[#allocation2 + $0x110] sm:$0xff] }
 0x18a   : > { %v1060_v27 = vadd.f32 %v3902_v29, %v960_v20  ;;  %v2416_v5 = vpop.eup %2415  ;;  %v1748_v60 = vmul.f32 0.7978846, %v1716_v37  ;;  %v1558_v8 = vadd.f32 %v1526_v26, %v1458_v10  ;;  %v1128_v23 = vmul.f32 %v2457_v15, %v2679_v36  ;;  %v1392_v58 = vld [vmem:[#allocation2 + $0x109] sm:$0xff]  ;;  %v1393_v37 = vld [vmem:[#allocation2 + $0x111] sm:$0xff] }
 0x18b   : > { %v3441_v21 = vadd.f32 %v1527_v62, %v1459_v1  ;;  %v1810_v34 = vadd.f32 1.0, %v2416_v5  ;;  %v3444_v61 = vmul.f32 0.5, %v1556_v11  ;;  %v1749_v0 = vmul.f32 0.7978846, %v1717_v48  ;;  %v1492_v10 = vld [vmem:[#allocation2 + $0x10a] sm:$0xff] }
 0x18c   : > { %v2418_v31 = vpop.eup %2417  ;;  %v1159_v32 = vadd.f32 %v1127_v54, %v1059_v46  ;;  %2419 = vtanh.f32 %v1748_v60  ;;  %v1160_v40 = vadd.f32 %v1128_v23, %v1060_v27  ;;  %v1227_v22 = vmul.f32 %v1490_v41, %v2685_v42  ;;  %v3903_v60 = vld [vmem:[#allocation52_spill] sm:$0xff]  ;;  %v3904_v15 = vld [vmem:[#allocation50_spill] sm:$0xff] }
 0x18d   : > { %v1811_v19 = vadd.f32 1.0, %v2418_v31  ;;  %v1842_v9 = vmul.f32 %v1810_v34, %v1586_v55  ;;  %2421 = vtanh.f32 %v1749_v0  ;;  %v1622_v26 = vmul.f32 0.044715, %v1558_v8  ;;  %v3905_v31 = vld [vmem:[#allocation57_spill] sm:$0xff]  ;;  %v3906_v34 = vld [vmem:[#allocation51_spill] sm:$0xff] }
 0x18e   : > { %v1623_v3 = vmul.f32 0.044715, %v3441_v21  ;;  %v1228_v47 = vmul.f32 %v1491_v51, %v2685_v42  ;;  %v1259_v11 = vadd.f32 %v1227_v22, %v1159_v32  ;;  %v1328_v20 = vmul.f32 %v2687_v43, %v1292_v53 }
 0x18f   : > { %v1843_v14 = vmul.f32 %v1811_v19, %v1587_v25  ;;  %v1589_v1 = vmul.f32 0.5, %v3417_v39  ;;  %v1654_v62 = vmul.f32 %v1622_v26, %v1558_v8  ;;  %v1329_v55 = vmul.f32 %v2687_v43, %v1293_v35  ;;  %v1493_v25 = vld [vmem:[#allocation2 + $0x112] sm:$0xff]  ;;  %v3907_v26 = vld [vmem:[#allocation61_spill] sm:$0xff] }
 0x190   : > { %v1655_v41 = vmul.f32 %v1623_v3, %v3441_v21  ;;  %v1260_v12 = vadd.f32 %v1228_v47, %v1160_v40  ;;  %v1360_v46 = vadd.f32 %v1328_v20, %v1259_v11  ;;  %v1428_v29 = vmul.f32 %v2698_v49, %v1392_v58  ;;  %v2458_v40 = vld [vmem:[#allocation2 + $0x109] sm:$0xff]  ;;  %v2459_v20 = vld [vmem:[#allocation2 + $0x111] sm:$0xff] }
 0x191   : > { %v1868_v48 = vpack.c.bf16 %v1843_v14, %v1842_v9  ;;  %v1686_v27 = vmul.f32 %v1654_v62, %v1558_v8  ;;  %v1429_v16 = vmul.f32 %v2698_v49, %v1393_v37  ;;  %v1528_v54 = vmul.f32 %v2700_v50, %v1492_v10 }
 0x192   : > { %v1687_v51 = vmul.f32 %v1655_v41, %v3441_v21  ;;  %v1361_v39 = vadd.f32 %v1329_v55, %v1260_v12  ;;  %v1460_v5 = vadd.f32 %v1428_v29, %v1360_v46  ;;  %v961_v23 = vadd.f32 %v3904_v15, %v3903_v60  ;;  %v1294_v46 = vld [vmem:[#allocation2 + $0x120] sm:$0xff]  ;;  %v1395_v60 = vld [vmem:[#allocation2 + $0x129] sm:$0xff] }
 0x193   : > { %2359 = vmatprep.mubr.msk.bf16.mxu1 %vm591_vm2, %v1868_v48  ;;  %v962_v0 = vadd.f32 %v3906_v34, %v3905_v31  ;;  %v1718_v32 = vadd.f32 %v1686_v27, %v1558_v8  ;;  %v1529_v19 = vmul.f32 %v2700_v50, %v1493_v25  ;;  %v1129_v22 = vmul.f32 %v2458_v40, %v2679_v36  ;;  %v1494_v34 = vld [vmem:[#allocation2 + $0x122] sm:$0xff] }
 0x194   : > { %v1719_v53 = vadd.f32 %v1687_v51, %v3441_v21  ;;  %v1461_v35 = vadd.f32 %v1429_v16, %v1361_v39  ;;  %v1560_v9 = vadd.f32 %v1528_v54, %v1460_v5  ;;  %v1061_v3 = vadd.f32 %v3907_v26, %v961_v23  ;;  %v1394_v5 = vld [vmem:[#allocation2 + $0x121] sm:$0xff] }
 0x195   : > { %v1062_v58 = vadd.f32 %v3100_v30, %v962_v0  ;;  %v3467_v14 = vmul.f32 0.5, %v1558_v8  ;;  %v1750_v47 = vmul.f32 0.7978846, %v1718_v32  ;;  %v1130_v37 = vmul.f32 %v2459_v20, %v2679_v36  ;;  %v1295_v8 = vld [vmem:[#allocation2 + $0x128] sm:$0xff]  ;;  %v3909_v20 = vld [vmem:[#allocation67_spill] sm:$0xff] }
 0x196   : > { %v1751_v11 = vmul.f32 0.7978846, %v1719_v53  ;;  %v2420_v62 = vpop.eup %2419  ;;  %v3470_v41 = vadd.f32 %v1529_v19, %v1461_v35  ;;  %v1624_v55 = vmul.f32 0.044715, %v1560_v9  ;;  %v1161_v48 = vadd.f32 %v1129_v22, %v1061_v3  ;;  %v1495_v35 = vld [vmem:[#allocation2 + $0x12a] sm:$0xff] }
 0x197   : > { %v1229_v12 = vmul.f32 %v1492_v10, %v2685_v42  ;;  %v2422_v29 = vpop.eup %2421  ;;  %v1812_v27 = vadd.f32 1.0, %v2420_v62  ;;  %2423 = vtanh.f32 %v1750_v47  ;;  %v1162_v51 = vadd.f32 %v1130_v37, %v1062_v58  ;;  %v3910_v62 = vld [vmem:[#allocation70_spill] sm:$0xff] }
 0x198   : > { %v1230_v30 = vmul.f32 %v1493_v25, %v2685_v42  ;;  %v1813_v16 = vadd.f32 1.0, %v2422_v29  ;;  %v3475_v54 = vmul.f32 0.5, %v3441_v21  ;;  %2425 = vtanh.f32 %v1751_v11 }
 0x199   : > { %v1625_v39 = vmul.f32 0.044715, %v3470_v41  ;;  %v1656_v15 = vmul.f32 %v1624_v55, %v1560_v9  ;;  %v1261_v23 = vadd.f32 %v1229_v12, %v1161_v48  ;;  %v1330_v31 = vmul.f32 %v2687_v43, %v1294_v46  ;;  %v3911_v55 = vld [vmem:[#allocation68_spill] sm:$0xff] }
 0x19a   : > { %v1262_v10 = vadd.f32 %v1230_v30, %v1162_v51  ;;  %v1844_v0 = vmul.f32 %v1812_v27, %v3444_v61  ;;  %v1845_v32 = vmul.f32 %v1813_v16, %v1589_v1  ;;  %v1331_v53 = vmul.f32 %v2687_v43, %v1295_v8  ;;  %v3908_v1 = vld [vmem:[#allocation66_spill] sm:$0xff]  ;;  %v3912_v16 = vld [vmem:[#allocation60_spill] sm:$0xff] }
 0x19b   : > { %v1657_v25 = vmul.f32 %v1625_v39, %v3470_v41  ;;  %v1688_v21 = vmul.f32 %v1656_v15, %v1560_v9  ;;  %v1362_v19 = vadd.f32 %v1330_v31, %v1261_v23  ;;  %v1430_v40 = vmul.f32 %v2698_v49, %v1394_v5  ;;  %v2460_v27 = vld [vmem:[#allocation2 + $0x121] sm:$0xff]  ;;  %v2461_v31 = vld [vmem:[#allocation2 + $0x129] sm:$0xff] }
 0x19c   : > { %v1431_v22 = vmul.f32 %v2698_v49, %v1395_v60  ;;  %v1869_v26 = vpack.c.bf16 %v1845_v32, %v1844_v0  ;;  %v1363_v58 = vadd.f32 %v1331_v53, %v1262_v10  ;;  %v1530_v47 = vmul.f32 %v2700_v50, %v1494_v34  ;;  %v3913_v5 = vld [vmem:[#allocation65_spill] sm:$0xff] }
 0x19d   : > { %v1689_v3 = vmul.f32 %v1657_v25, %v3470_v41  ;;  %v1720_v11 = vadd.f32 %v1688_v21, %v1560_v9  ;;  %v1462_v61 = vadd.f32 %v1430_v40, %v1362_v19  ;;  %v963_v37 = vadd.f32 %v3909_v20, %v3908_v1  ;;  %v1296_v19 = vld [vmem:[#allocation2 + $0x138] sm:$0xff]  ;;  %v1397_v20 = vld [vmem:[#allocation2 + $0x141] sm:$0xff] }
 0x19e   : > { %v964_v48 = vadd.f32 %v3911_v55, %v3910_v62  ;;  %2360 = vmatmul.mubr.msk.bf16.gmra.mrb[12].mxu1 %vm591_vm2, %v1869_v26  ;;  %v1463_v46 = vadd.f32 %v1431_v22, %v1363_v58  ;;  %v1531_v29 = vmul.f32 %v2700_v50, %v1495_v35  ;;  %v1131_v51 = vmul.f32 %v2460_v27, %v2679_v36  ;;  %v1396_v1 = vld [vmem:[#allocation2 + $0x139] sm:$0xff] }
 0x19f   : > { %v1721_v12 = vadd.f32 %v1689_v3, %v3470_v41  ;;  %v1752_v30 = vmul.f32 0.7978846, %v1720_v11  ;;  %v1562_v8 = vadd.f32 %v1530_v47, %v1462_v61  ;;  %v1063_v39 = vadd.f32 %v3912_v16, %v963_v37 }
 0x1a0   : > { %v1064_v60 = vadd.f32 %v3913_v5, %v964_v48  ;;  %v3496_v15 = vmul.f32 0.5, %v1560_v9  ;;  %v1563_v10 = vadd.f32 %v1531_v29, %v1463_v46  ;;  %v1132_v0 = vmul.f32 %v2461_v31, %v2679_v36  ;;  %v1297_v9 = vld [vmem:[#allocation2 + $0x140] sm:$0xff] }
 0x1a1   : > { %v1753_v23 = vmul.f32 0.7978846, %v1721_v12  ;;  %v2424_v32 = vpop.eup %2423  ;;  %2427 = vtanh.f32 %v1752_v30  ;;  %v1626_v25 = vmul.f32 0.044715, %v1562_v8  ;;  %v1163_v53 = vadd.f32 %v1131_v51, %v1063_v39  ;;  %v1496_v48 = vld [vmem:[#allocation2 + $0x13a] sm:$0xff]  ;;  %v1497_v39 = vld [vmem:[#allocation2 + $0x142] sm:$0xff] }
 0x1a2   : > { %v1231_v21 = vmul.f32 %v1494_v34, %v2685_v42  ;;  %v2426_v40 = vpop.eup %2425  ;;  %v1814_v22 = vadd.f32 1.0, %v2424_v32  ;;  %v1627_v26 = vmul.f32 0.044715, %v1563_v10  ;;  %v1232_v3 = vmul.f32 %v1495_v35, %v2685_v42 }
 0x1a3   : > { %2429 = vtanh.f32 %v1753_v23  ;;  %v1815_v58 = vadd.f32 1.0, %v2426_v40  ;;  %v1658_v47 = vmul.f32 %v1626_v25, %v1562_v8  ;;  %v1164_v11 = vadd.f32 %v1132_v0, %v1064_v60  ;;  %v3914_v0 = vld [vmem:[#allocation64_spill] sm:$0xff]  ;;  %v3916_v25 = vld [vmem:[#allocation69_spill] sm:$0xff] }
 0x1a4   : > { %v1263_v61 = vadd.f32 %v1231_v21, %v1163_v53  ;;  %v1846_v37 = vmul.f32 %v1814_v22, %v3467_v14  ;;  %v1593_v62 = vmul.f32 0.5, %v3470_v41  ;;  %v1659_v55 = vmul.f32 %v1627_v26, %v1563_v10  ;;  %v3917_v53 = vld [vmem:[#allocation63_spill] sm:$0xff] }
 0x1a5   : > { %v1332_v34 = vmul.f32 %v2687_v43, %v1296_v19  ;;  %v1847_v12 = vmul.f32 %v1815_v58, %v3475_v54  ;;  %v1690_v46 = vmul.f32 %v1658_v47, %v1562_v8  ;;  %v1264_v29 = vadd.f32 %v1232_v3, %v1164_v11  ;;  %v3915_v54 = vld [vmem:[#allocation62_spill] sm:$0xff]  ;;  %v3918_v58 = vld [vmem:[#allocation72_spill] sm:$0xff] }
 0x1a6   : > { %v1333_v35 = vmul.f32 %v2687_v43, %v1297_v9  ;;  %v1691_v27 = vmul.f32 %v1659_v55, %v1563_v10  ;;  %v1432_v30 = vmul.f32 %v2698_v49, %v1396_v1  ;;  %v1433_v16 = vmul.f32 %v2698_v49, %v1397_v20 }
 0x1a7   : > { %v1364_v51 = vadd.f32 %v1332_v34, %v1263_v61  ;;  %v1870_v14 = vpack.c.bf16 %v1847_v12, %v1846_v37  ;;  %v1722_v5 = vadd.f32 %v1690_v46, %v1562_v8  ;;  %v1532_v60 = vmul.f32 %v2700_v50, %v1496_v48  ;;  %v2462_v37 = vld [vmem:[#allocation2 + $0x139] sm:$0xff]  ;;  %v2463_v46 = vld [vmem:[#allocation2 + $0x141] sm:$0xff] }
 0x1a8   : > { %v1365_v41 = vadd.f32 %v1333_v35, %v1264_v29  ;;  %v1723_v23 = vadd.f32 %v1691_v27, %v1563_v10  ;;  %v965_v32 = vadd.f32 %v3915_v54, %v3914_v0  ;;  %v966_v21 = vadd.f32 %v3917_v53, %v3916_v25  ;;  %v1298_v35 = vld [vmem:[#allocation2 + $0x150] sm:$0xff] }
 0x1a9   : > { %v1464_v31 = vadd.f32 %v1432_v30, %v1364_v51  ;;  %2363 = vmatprep.mubr.msk.bf16.mxu1 %vm591_vm2, %v1870_v14  ;;  %v3514_v19 = vmul.f32 0.5, %v1562_v8  ;;  %v1754_v40 = vmul.f32 0.7978846, %v1722_v5  ;;  %v1533_v26 = vmul.f32 %v2700_v50, %v1497_v39  ;;  %v1299_v30 = vld [vmem:[#allocation2 + $0x158] sm:$0xff] }
 0x1aa   : > { %v1465_v22 = vadd.f32 %v1433_v16, %v1365_v41  ;;  %v1755_v3 = vmul.f32 0.7978846, %v1723_v23  ;;  %v1065_v47 = vadd.f32 %v3918_v58, %v965_v32  ;;  %v1066_v11 = vadd.f32 %v3172_v63, %v966_v21  ;;  %v1398_v16 = vld [vmem:[#allocation2 + $0x151] sm:$0xff]  ;;  %v1399_v23 = vld [vmem:[#allocation2 + $0x159] sm:$0xff] }
 0x1ab   : > { %v3517_v9 = vadd.f32 %v1532_v60, %v1464_v31  ;;  %v2428_v61 = vpop.eup %2427  ;;  %v3521_v1 = vmul.f32 0.5, %v1563_v10  ;;  %2431 = vtanh.f32 %v1754_v40  ;;  %v1133_v8 = vmul.f32 %v2462_v37, %v2679_v36  ;;  %v1498_v25 = vld [vmem:[#allocation2 + $0x152] sm:$0xff]  ;;  %v1499_v40 = vld [vmem:[#allocation2 + $0x15a] sm:$0xff] }
 0x1ac   : > { %v3523_v20 = vadd.f32 %v1533_v26, %v1465_v22  ;;  %v1816_v34 = vadd.f32 1.0, %v2428_v61  ;;  %2433 = vtanh.f32 %v1755_v3  ;;  %v1134_v29 = vmul.f32 %v2463_v46, %v2679_v36  ;;  %v3919_v46 = vld [vmem:[#allocation71_spill] sm:$0xff] }
 0x1ad   : > { %v2430_v55 = vpop.eup %2429  ;;  %v1628_v12 = vmul.f32 0.044715, %v3517_v9  ;;  %v1165_v10 = vadd.f32 %v1133_v8, %v1065_v47  ;;  %v1233_v51 = vmul.f32 %v1496_v48, %v2685_v42  ;;  %v1234_v60 = vmul.f32 %v1497_v39, %v2685_v42 }
 0x1ae   : > { %v1817_v27 = vadd.f32 1.0, %v2430_v55  ;;  %v1629_v63 = vmul.f32 0.044715, %v3523_v20  ;;  %v1848_v14 = vmul.f32 %v1816_v34, %v3496_v15  ;;  %v1166_v41 = vadd.f32 %v1134_v29, %v1066_v11 }
 0x1af   : > { %v1660_v5 = vmul.f32 %v1628_v12, %v3517_v9  ;;  %v1265_v54 = vadd.f32 %v1233_v51, %v1165_v10  ;;  %v1334_v32 = vmul.f32 %v2687_v43, %v1298_v35  ;;  %v1335_v21 = vmul.f32 %v2687_v43, %v1299_v30  ;;  %v2464_v35 = vld [vmem:[#allocation2 + $0x151] sm:$0xff]  ;;  %v2465_v51 = vld [vmem:[#allocation2 + $0x159] sm:$0xff] }
 0x1b0   : > { %v1849_v31 = vmul.f32 %v1817_v27, %v1593_v62  ;;  %v1661_v0 = vmul.f32 %v1629_v63, %v3523_v20  ;;  %v1266_v48 = vadd.f32 %v1234_v60, %v1166_v41  ;;  %v1434_v15 = vmul.f32 %v2698_v49, %v1398_v16 }
 0x1b1   : > { %v1692_v53 = vmul.f32 %v1660_v5, %v3517_v9  ;;  %v1366_v39 = vadd.f32 %v1334_v32, %v1265_v54  ;;  %v1435_v62 = vmul.f32 %v2698_v49, %v1399_v23  ;;  %v1534_v47 = vmul.f32 %v2700_v50, %v1498_v25  ;;  %v1300_v23 = vld [vmem:[#allocation2 + $0x168] sm:$0xff] }
 0x1b2   : > { %v1871_v22 = vpack.c.bf16 %v1849_v31, %v1848_v14  ;;  %v1693_v26 = vmul.f32 %v1661_v0, %v3523_v20  ;;  %v1367_v58 = vadd.f32 %v1335_v21, %v1266_v48  ;;  %v967_v11 = vadd.f32 %v3150_v33, %v3152_v38  ;;  %v1301_v31 = vld [vmem:[#allocation2 + $0x170] sm:$0xff] }
 0x1b3   : > { %v1724_v3 = vadd.f32 %v1692_v53, %v3517_v9  ;;  %v1466_v37 = vadd.f32 %v1434_v15, %v1366_v39  ;;  %v1535_v8 = vmul.f32 %v2700_v50, %v1499_v40  ;;  %v968_v55 = vadd.f32 %v3162_v18, %v3182_v28  ;;  %v1400_v53 = vld [vmem:[#allocation2 + $0x169] sm:$0xff] }
 0x1b4   : > { %2364 = vmatmul.mubr.msk.bf16.gmra.mrb[16].mxu1 %vm591_vm2, %v1871_v22  ;;  %v1725_v61 = vadd.f32 %v1693_v26, %v3523_v20  ;;  %v1467_v12 = vadd.f32 %v1435_v62, %v1367_v58  ;;  %v1067_v29 = vadd.f32 %v3919_v46, %v967_v11  ;;  %v1135_v27 = vmul.f32 %v2464_v35, %v2679_v36  ;;  %v1500_v26 = vld [vmem:[#allocation2 + $0x16a] sm:$0xff] }
 0x1b5   : > { %v1756_v34 = vmul.f32 0.7978846, %v1724_v3  ;;  %v2432_v63 = vpop.eup %2431  ;;  %v3551_v33 = vadd.f32 %v1534_v47, %v1466_v37  ;;  %v1068_v38 = vadd.f32 %v3143_v24, %v968_v55  ;;  %v1136_v30 = vmul.f32 %v2465_v51, %v2679_v36  ;;  %v1501_v47 = vld [vmem:[#allocation2 + $0x172] sm:$0xff] }
 0x1b6   : > { %v1757_v10 = vmul.f32 0.7978846, %v1725_v61  ;;  %v2434_v16 = vpop.eup %2433  ;;  %v1818_v14 = vadd.f32 1.0, %v2432_v63  ;;  %v3555_v18 = vadd.f32 %v1535_v8, %v1467_v12  ;;  %v1167_v28 = vadd.f32 %v1135_v27, %v1067_v29  ;;  %v2466_v27 = vld [vmem:[#allocation2 + $0x169] sm:$0xff] }
 0x1b7   : > { %2435 = vtanh.f32 %v1756_v34  ;;  %v1819_v5 = vadd.f32 1.0, %v2434_v16  ;;  %v1630_v41 = vmul.f32 0.044715, %v3551_v33  ;;  %v1235_v60 = vmul.f32 %v1498_v25, %v2685_v42  ;;  %v1401_v25 = vld [vmem:[#allocation2 + $0x171] sm:$0xff]  ;;  %v3920_v34 = vld [vmem:[#allocation73_spill] sm:$0xff] }
 0x1b8   : > { %2437 = vtanh.f32 %v1757_v10  ;;  %v3561_v24 = vadd.f32 %v3221_v56, %v3265_v52  ;;  %v1850_v0 = vmul.f32 %v1818_v14, %v3514_v19  ;;  %v1631_v54 = vmul.f32 0.044715, %v3555_v18 }
 0x1b9   : > { %v1168_v32 = vadd.f32 %v1136_v30, %v1068_v38  ;;  %v1851_v48 = vmul.f32 %v1819_v5, %v3521_v1  ;;  %v1662_v21 = vmul.f32 %v1630_v41, %v3551_v33  ;;  %v1236_v15 = vmul.f32 %v1499_v40, %v2685_v42 }
 0x1ba   : > { %v1267_v22 = vadd.f32 %v1235_v60, %v1167_v28  ;;  %v1596_v39 = vmul.f32 0.5, %v3517_v9  ;;  %v1663_v56 = vmul.f32 %v1631_v54, %v3555_v18  ;;  %v1336_v52 = vmul.f32 %v2687_v43, %v1300_v23 }
 0x1bb   : > { %v1337_v19 = vmul.f32 %v2687_v43, %v1301_v31  ;;  %v1872_v62 = vpack.c.bf16 %v1851_v48, %v1850_v0  ;;  %v1694_v3 = vmul.f32 %v1662_v21, %v3551_v33  ;;  %v1268_v58 = vadd.f32 %v1236_v15, %v1168_v32  ;;  %v1302_v31 = vld [vmem:[#allocation2 + $0x180] sm:$0xff] }
 0x1bc   : > { %v1436_v1 = vmul.f32 %v2698_v49, %v1400_v53  ;;  %v1695_v40 = vmul.f32 %v1663_v56, %v3555_v18  ;;  %v1368_v11 = vadd.f32 %v1336_v52, %v1267_v22  ;;  %v1437_v61 = vmul.f32 %v2698_v49, %v1401_v25  ;;  %v1402_v21 = vld [vmem:[#allocation2 + $0x181] sm:$0xff]  ;;  %v1403_v52 = vld [vmem:[#allocation2 + $0x189] sm:$0xff] }
 0x1bd   : > { %v1536_v9 = vmul.f32 %v2700_v50, %v1500_v26  ;;  %2367 = vmatprep.mubr.msk.bf16.mxu1 %vm591_vm2, %v1872_v62  ;;  %v1726_v37 = vadd.f32 %v1694_v3, %v3551_v33  ;;  %v1369_v8 = vadd.f32 %v1337_v19, %v1268_v58  ;;  %v969_v55 = vadd.f32 %v3137_v17, %v3145_v44  ;;  %v1502_v19 = vld [vmem:[#allocation2 + $0x182] sm:$0xff] }
 0x1be   : > { %v970_v12 = vadd.f32 %v3920_v34, %v3169_v4  ;;  %v1727_v46 = vadd.f32 %v1695_v40, %v3555_v18  ;;  %v1468_v29 = vadd.f32 %v1436_v1, %v1368_v11  ;;  %v1537_v35 = vmul.f32 %v2700_v50, %v1501_v47  ;;  %v2467_v4 = vld [vmem:[#allocation2 + $0x171] sm:$0xff] }
 0x1bf   : > { %v1137_v63 = vmul.f32 %v2466_v27, %v2679_v36  ;;  %v1758_v10 = vmul.f32 0.7978846, %v1726_v37  ;;  %v1469_v38 = vadd.f32 %v1437_v61, %v1369_v8  ;;  %v1069_v51 = vadd.f32 %v3202_v7, %v969_v55  ;;  %v1503_v11 = vld [vmem:[#allocation2 + $0x18a] sm:$0xff] }
 0x1c0   : > { %v1070_v30 = vadd.f32 %v3238_v2, %v970_v12  ;;  %v1597_v17 = vmul.f32 0.5, %v3523_v20  ;;  %v1759_v44 = vmul.f32 0.7978846, %v1727_v46  ;;  %v3589_v14 = vadd.f32 %v1536_v9, %v1468_v29  ;;  %v1303_v20 = vld [vmem:[#allocation2 + $0x188] sm:$0xff] }
 0x1c1   : > { %v2436_v16 = vpop.eup %2435  ;;  %v1138_v28 = vmul.f32 %v2467_v4, %v2679_v36  ;;  %2439 = vtanh.f32 %v1758_v10  ;;  %v3592_v60 = vadd.f32 %v1537_v35, %v1469_v38  ;;  %v1169_v23 = vadd.f32 %v1137_v63, %v1069_v51  ;;  %v1104_v55 = vld [vmem:[#allocation2 + $0x189] sm:$0xff] }
 0x1c2   : > { %v2438_v5 = vpop.eup %2437  ;;  %v1820_v41 = vadd.f32 1.0, %v2436_v16  ;;  %2441 = vtanh.f32 %v1759_v44  ;;  %v1632_v7 = vmul.f32 0.044715, %v3589_v14  ;;  %v1237_v2 = vmul.f32 %v1500_v26, %v2685_v42 }
 0x1c3   : > { %v1821_v0 = vadd.f32 1.0, %v2438_v5  ;;  %v1633_v32 = vmul.f32 0.044715, %v3592_v60  ;;  %v1170_v53 = vadd.f32 %v1138_v28, %v1070_v30  ;;  %v1238_v48 = vmul.f32 %v1501_v47, %v2685_v42  ;;  %v1304_v5 = vld [vmem:[#allocation2 + $0x198] sm:$0xff] }
 0x1c4   : > { %v1852_v54 = vmul.f32 %v1820_v41, %v1596_v39  ;;  %v1664_v22 = vmul.f32 %v1632_v7, %v3589_v14  ;;  %v1269_v25 = vadd.f32 %v1237_v2, %v1169_v23  ;;  %v1338_v56 = vmul.f32 %v2687_v43, %v1302_v31  ;;  %v1305_v41 = vld [vmem:[#allocation2 + $0x1a0] sm:$0xff] }
 0x1c5   : > { %v1853_v15 = vmul.f32 %v1821_v0, %v1597_v17  ;;  %v1598_v62 = vmul.f32 0.5, %v3551_v33  ;;  %v1665_v26 = vmul.f32 %v1633_v32, %v3592_v60  ;;  %v1270_v3 = vadd.f32 %v1238_v48, %v1170_v53  ;;  %v1103_v33 = vld [vmem:[#allocation2 + $0x181] sm:$0xff]  ;;  %v1404_v31 = vld [vmem:[#allocation2 + $0x199] sm:$0xff] }
 0x1c6   : > { %v1339_v39 = vmul.f32 %v2687_v43, %v1303_v20  ;;  %v1696_v1 = vmul.f32 %v1664_v22, %v3589_v14  ;;  %v1370_v47 = vadd.f32 %v1338_v56, %v1269_v25  ;;  %v1438_v40 = vmul.f32 %v2698_v49, %v1402_v21  ;;  %v1405_v20 = vld [vmem:[#allocation2 + $0x1a1] sm:$0xff] }
 0x1c7   : > { %v1873_v58 = vpack.c.bf16 %v1853_v15, %v1852_v54  ;;  %v1697_v61 = vmul.f32 %v1665_v26, %v3592_v60  ;;  %v1439_v37 = vmul.f32 %v2698_v49, %v1403_v52  ;;  %v1538_v8 = vmul.f32 %v2700_v50, %v1502_v19  ;;  %v1504_v54 = vld [vmem:[#allocation2 + $0x19a] sm:$0xff]  ;;  %v1505_v15 = vld [vmem:[#allocation2 + $0x1a2] sm:$0xff] }
 0x1c8   : > { %v1371_v9 = vadd.f32 %v1339_v39, %v1270_v3  ;;  %v1728_v34 = vadd.f32 %v1696_v1, %v3589_v14  ;;  %v1470_v12 = vadd.f32 %v1438_v40, %v1370_v47  ;;  %v971_v46 = vadd.f32 %v3228_v6, %v3199_v59 }
 0x1c9   : > { %2368 = vmatmul.mubr.msk.bf16.gmra.mrb[20].mxu1 %vm591_vm2, %v1873_v58  ;;  %v972_v29 = vadd.f32 %v3231_v57, %v3561_v24  ;;  %v1599_v35 = vmul.f32 0.5, %v3555_v18  ;;  %v1729_v27 = vadd.f32 %v1697_v61, %v3592_v60  ;;  %v1539_v10 = vmul.f32 %v2700_v50, %v1503_v11 }
 0x1ca   : > { %v1471_v63 = vadd.f32 %v1439_v37, %v1371_v9  ;;  %v1760_v38 = vmul.f32 0.7978846, %v1728_v34  ;;  %v3617_v51 = vadd.f32 %v1538_v8, %v1470_v12  ;;  %v1071_v30 = vadd.f32 %v3192_v13, %v971_v46 }
 0x1cb   : > { %v1072_v16 = vadd.f32 %v3211_v45, %v972_v29  ;;  %v2440_v17 = vpop.eup %2439  ;;  %v1761_v44 = vmul.f32 0.7978846, %v1729_v27  ;;  %v1139_v6 = vmul.f32 %v2679_v36, %v1103_v33  ;;  %v1140_v57 = vmul.f32 %v2679_v36, %v1104_v55 }
 0x1cc   : > { %v3621_v59 = vadd.f32 %v1539_v10, %v1471_v63  ;;  %v2442_v18 = vpop.eup %2441  ;;  %v1822_v24 = vadd.f32 1.0, %v2440_v17  ;;  %2443 = vtanh.f32 %v1760_v38  ;;  %v1634_v4 = vmul.f32 0.044715, %v3617_v51 }
 0x1cd   : > { %v1239_v28 = vmul.f32 %v1502_v19, %v2685_v42  ;;  %v1823_v13 = vadd.f32 1.0, %v2442_v18  ;;  %2445 = vtanh.f32 %v1761_v44  ;;  %v1240_v23 = vmul.f32 %v1503_v11, %v2685_v42 }
 0x1ce   : > { %v1635_v45 = vmul.f32 0.044715, %v3621_v59  ;;  %v1854_v0 = vmul.f32 %v1822_v24, %v1598_v62  ;;  %v1666_v7 = vmul.f32 %v1634_v4, %v3617_v51  ;;  %v1171_v36 = vadd.f32 %v1139_v6, %v1071_v30 }
 0x1cf   : > { %v1172_v2 = vadd.f32 %v1140_v57, %v1072_v16  ;;  %v1855_v32 = vmul.f32 %v1823_v13, %v1599_v35  ;;  %v1340_v48 = vmul.f32 %v2687_v43, %v1304_v5  ;;  %v1341_v21 = vmul.f32 %v2687_v43, %v1305_v41 }
 0x1d0   : > { %v1667_v53 = vmul.f32 %v1635_v45, %v3621_v59  ;;  %v1698_v22 = vmul.f32 %v1666_v7, %v3617_v51  ;;  %v1271_v25 = vadd.f32 %v1239_v28, %v1171_v36  ;;  %v1440_v56 = vmul.f32 %v2698_v49, %v1404_v31 }
 0x1d1   : > { %v1272_v42 = vadd.f32 %v1240_v23, %v1172_v2  ;;  %v1874_v52 = vpack.c.bf16 %v1855_v32, %v1854_v0  ;;  %v1441_v62 = vmul.f32 %v2698_v49, %v1405_v20  ;;  %v1540_v26 = vmul.f32 %v2700_v50, %v1504_v54 }
 0x1d2   : > { %v1699_v19 = vmul.f32 %v1667_v53, %v3621_v59  ;;  %v1730_v3 = vadd.f32 %v1698_v22, %v3617_v51  ;;  %v1372_v39 = vadd.f32 %v1340_v48, %v1271_v25  ;;  %v1541_v43 = vmul.f32 %v2700_v50, %v1505_v15 }
 0x1d3   : > { %v1373_v58 = vadd.f32 %v1341_v21, %v1272_v42  ;;  %2371 = vmatprep.mubr.msk.bf16.mxu1 %vm591_vm2, %v1874_v52  ;;  %v1600_v55 = vmul.f32 0.5, %v3589_v14  ;;  %v1601_v34 = vmul.f32 0.5, %v3592_v60  ;;  %v1602_v60 = vmul.f32 0.5, %v3617_v51 }
 0x1d4   : > { %v1731_v1 = vadd.f32 %v1699_v19, %v3621_v59  ;;  %v1762_v47 = vmul.f32 0.7978846, %v1730_v3  ;;  %v1472_v40 = vadd.f32 %v1440_v56, %v1372_v39  ;;  %v1603_v24 = vmul.f32 0.5, %v3621_v59  ;;  %v3652_v59 = vld [vmem:[%s3766_s6] ss:$0 sm:$0xff] }
 0x1d5   : > { %v1473_v11 = vadd.f32 %v1441_v62, %v1373_v58 }
 0x1d6   : > { %v1763_v61 = vmul.f32 0.7978846, %v1731_v1  ;;  %v2444_v9 = vpop.eup %2443  ;;  %2447 = vtanh.f32 %v1762_v47  ;;  %v1572_v37 = vadd.f32 %v1540_v26, %v1472_v40 }
 0x1d7   : > { %v1573_v49 = vadd.f32 %v1541_v43, %v1473_v11  ;;  %v2446_v8 = vpop.eup %2445  ;;  %v1824_v33 = vadd.f32 1.0, %v2444_v9 }
 0x1d8   : > { %2449 = vtanh.f32 %v1763_v61  ;;  %v1825_v50 = vadd.f32 1.0, %v2446_v8  ;;  %v1636_v12 = vmul.f32 0.044715, %v1572_v37  ;;  %v1604_v31 = vmul.f32 0.5, %v1572_v37 }
 0x1d9   : > { %v1637_v46 = vmul.f32 0.044715, %v1573_v49  ;;  %v1856_v29 = vmul.f32 %v1824_v33, %v1600_v55  ;;  %v1605_v0 = vmul.f32 0.5, %v1573_v49 }
 0x1da   : > { %v1857_v35 = vmul.f32 %v1825_v50, %v1601_v34  ;;  %v1668_v27 = vmul.f32 %v1636_v12, %v1572_v37 }
 0x1db   : > { %v1669_v63 = vmul.f32 %v1637_v46, %v1573_v49 }
 0x1dc   : > { %v1875_v10 = vpack.c.bf16 %v1857_v35, %v1856_v29  ;;  %v1700_v38 = vmul.f32 %v1668_v27, %v1572_v37 }
 0x1dd   : > { %v1701_v30 = vmul.f32 %v1669_v63, %v1573_v49 }
 0x1de   : > { %2372 = vmatmul.mubr.msk.bf16.gmra.mrb[24].mxu1 %vm591_vm2, %v1875_v10  ;;  %v1732_v16 = vadd.f32 %v1700_v38, %v1572_v37 }
 0x1df   : > { %v1733_v17 = vadd.f32 %v1701_v30, %v1573_v49 }
 0x1e0   : > { %v2448_v44 = vpop.eup %2447  ;;  %v1764_v6 = vmul.f32 0.7978846, %v1732_v16 }
 0x1e1   : > { %v1826_v14 = vadd.f32 1.0, %v2448_v44  ;;  %v1765_v18 = vmul.f32 0.7978846, %v1733_v17 }
 0x1e2   : > { %v2450_v57 = vpop.eup %2449  ;;  %2451 = vtanh.f32 %v1764_v6 }
 0x1e3   : > { %v1827_v4 = vadd.f32 1.0, %v2450_v57  ;;  %2453 = vtanh.f32 %v1765_v18  ;;  %v1858_v28 = vmul.f32 %v1826_v14, %v1602_v60 }
 0x1e5   : > { %v1859_v5 = vmul.f32 %v1827_v4, %v1603_v24 }
 0x1e7   : > { %v1876_v41 = vpack.c.bf16 %v1859_v5, %v1858_v28 }
 0x1e9   : > { %2375 = vmatprep.mubr.msk.bf16.mxu1 %vm591_vm2, %v1876_v41 }
 0x1ec   : > { %v2452_v13 = vpop.eup %2451 }
 0x1ed   : > { %v2454_v45 = vpop.eup %2453  ;;  %v1828_v23 = vadd.f32 1.0, %v2452_v13 }
 0x1ee   : > { %v1829_v7 = vadd.f32 1.0, %v2454_v45 }
 0x1ef   : > { %v1860_v36 = vmul.f32 %v1828_v23, %v1604_v31 }
 0x1f0   : > { %v1861_v2 = vmul.f32 %v1829_v7, %v1605_v0 }
 0x1f2   : > { %v1877_v51 = vpack.c.bf16 %v1861_v2, %v1860_v36 }
 0x1f4   : > { %2376 = vmatmul.mubr.msk.bf16.gmra.mrb[28].mxu1 %vm591_vm2, %v1877_v51 }
 0x231   : > { %v2349_v20 = vpop.f32.mrb[0].mxu1 }
 0x232   : > { %v2107_v54 = vadd.f32 %v2349_v20, %v3652_v59  ;;  %v1972_v32 = vpop.f32.mrb[1].mxu1 }
 0x233   : > { %v2105_v53 = vadd.f32 %v3652_v59, %v1972_v32  ;;  %v2350_v48 = vpop.f32.mrb[2].mxu1 }
 0x234   : > { %2139 = vst.msk [vmem:[%s3659_s30 + $0x10] sm:$0xff] %vm339_vm1, %v2107_v54  ;;  %v2108_v21 = vadd.f32 %v2350_v48, %v3652_v59  ;;  %v1975_v15 = vpop.f32.mrb[3].mxu1 }
 0x235   : > { %2137 = vst.msk [vmem:[%s3659_s30] sm:$0xff] %vm339_vm1, %v2105_v53  ;;  %v2106_v22 = vadd.f32 %v3652_v59, %v1975_v15 }
 0x236   : > { %2140 = vst.msk [vmem:[%s3659_s30 + $0x18] sm:$0xff] %vm339_vm1, %v2108_v21 }
 0x237   : > { %2138 = vst.msk [vmem:[%s3659_s30 + $0x8] sm:$0xff] %vm339_vm1, %v2106_v22 }
 0x247   : > { %v2353_v25 = vpop.f32.mrb[4].mxu1 }
 0x248   : > { %v2111_v42 = vadd.f32 %v2353_v25, %v3652_v59  ;;  %v1988_v56 = vpop.f32.mrb[5].mxu1 }
 0x249   : > { %v2109_v52 = vadd.f32 %v3652_v59, %v1988_v56  ;;  %v2354_v19 = vpop.f32.mrb[6].mxu1 }
 0x24a   : > { %2143 = vst.msk [vmem:[%s3659_s30 + $0x30] sm:$0xff] %vm339_vm1, %v2111_v42  ;;  %v2112_v62 = vadd.f32 %v2354_v19, %v3652_v59  ;;  %v1991_v26 = vpop.f32.mrb[7].mxu1 }
 0x24b   : > { %2141 = vst.msk [vmem:[%s3659_s30 + $0x20] sm:$0xff] %vm339_vm1, %v2109_v52  ;;  %v2110_v3 = vadd.f32 %v3652_v59, %v1991_v26 }
 0x24c   : > { %2144 = vst.msk [vmem:[%s3659_s30 + $0x38] sm:$0xff] %vm339_vm1, %v2112_v62 }
 0x24d   : > { %2142 = vst.msk [vmem:[%s3659_s30 + $0x28] sm:$0xff] %vm339_vm1, %v2110_v3 }
 0x25c   : > { %v2357_v39 = vpop.f32.mrb[8].mxu1 }
 0x25d   : > { %v2115_v58 = vadd.f32 %v2357_v39, %v3652_v59  ;;  %v2004_v43 = vpop.f32.mrb[9].mxu1 }
 0x25e   : > { %v2113_v1 = vadd.f32 %v3652_v59, %v2004_v43  ;;  %v2358_v47 = vpop.f32.mrb[10].mxu1 }
 0x25f   : > { %2147 = vst.msk [vmem:[%s3659_s30 + $0x50] sm:$0xff] %vm339_vm1, %v2115_v58  ;;  %v2116_v40 = vadd.f32 %v2358_v47, %v3652_v59  ;;  %v2007_v11 = vpop.f32.mrb[11].mxu1 }
 0x260   : > { %2145 = vst.msk [vmem:[%s3659_s30 + $0x40] sm:$0xff] %vm339_vm1, %v2113_v1  ;;  %v2114_v61 = vadd.f32 %v3652_v59, %v2007_v11 }
 0x261   : > { %2148 = vst.msk [vmem:[%s3659_s30 + $0x58] sm:$0xff] %vm339_vm1, %v2116_v40 }
 0x262   : > { %2146 = vst.msk [vmem:[%s3659_s30 + $0x48] sm:$0xff] %vm339_vm1, %v2114_v61 }
 0x271   : > { %v2361_v9 = vpop.f32.mrb[12].mxu1 }
 0x272   : > { %v2119_v37 = vadd.f32 %v2361_v9, %v3652_v59  ;;  %v2020_v49 = vpop.f32.mrb[13].mxu1 }
 0x273   : > { %v2117_v8 = vadd.f32 %v3652_v59, %v2020_v49  ;;  %v2362_v33 = vpop.f32.mrb[14].mxu1 }
 0x274   : > { %2151 = vst.msk [vmem:[%s3659_s30 + $0x70] sm:$0xff] %vm339_vm1, %v2119_v37  ;;  %v2120_v55 = vadd.f32 %v2362_v33, %v3652_v59  ;;  %v2023_v34 = vpop.f32.mrb[15].mxu1 }
 0x275   : > { %2149 = vst.msk [vmem:[%s3659_s30 + $0x60] sm:$0xff] %vm339_vm1, %v2117_v8  ;;  %v2118_v50 = vadd.f32 %v3652_v59, %v2023_v34 }
 0x276   : > { %2152 = vst.msk [vmem:[%s3659_s30 + $0x78] sm:$0xff] %vm339_vm1, %v2120_v55 }
 0x277   : > { %2150 = vst.msk [vmem:[%s3659_s30 + $0x68] sm:$0xff] %vm339_vm1, %v2118_v50 }
 0x287   : > { %v2365_v12 = vpop.f32.mrb[16].mxu1 }
 0x288   : > { %v2123_v46 = vadd.f32 %v2365_v12, %v3652_v59  ;;  %v2036_v29 = vpop.f32.mrb[17].mxu1 }
 0x289   : > { %v2121_v35 = vadd.f32 %v3652_v59, %v2036_v29  ;;  %v2366_v27 = vpop.f32.mrb[18].mxu1 }
 0x28a   : > { %2155 = vst.msk [vmem:[%s3659_s30 + $0x90] sm:$0xff] %vm339_vm1, %v2123_v46  ;;  %v2124_v63 = vadd.f32 %v2366_v27, %v3652_v59  ;;  %v2039_v10 = vpop.f32.mrb[19].mxu1 }
 0x28b   : > { %2153 = vst.msk [vmem:[%s3659_s30 + $0x80] sm:$0xff] %vm339_vm1, %v2121_v35  ;;  %v2122_v38 = vadd.f32 %v3652_v59, %v2039_v10 }
 0x28c   : > { %2156 = vst.msk [vmem:[%s3659_s30 + $0x98] sm:$0xff] %vm339_vm1, %v2124_v63 }
 0x28d   : > { %2154 = vst.msk [vmem:[%s3659_s30 + $0x88] sm:$0xff] %vm339_vm1, %v2122_v38 }
 0x29c   : > { %v2369_v30 = vpop.f32.mrb[20].mxu1 }
 0x29d   : > { %v2127_v16 = vadd.f32 %v2369_v30, %v3652_v59  ;;  %v2052_v17 = vpop.f32.mrb[21].mxu1 }
 0x29e   : > { %v2125_v44 = vadd.f32 %v3652_v59, %v2052_v17  ;;  %v2370_v6 = vpop.f32.mrb[22].mxu1 }
 0x29f   : > { %2159 = vst.msk [vmem:[%s3659_s30 + $0xb0] sm:$0xff] %vm339_vm1, %v2127_v16  ;;  %v2128_v57 = vadd.f32 %v2370_v6, %v3652_v59  ;;  %v2055_v14 = vpop.f32.mrb[23].mxu1 }
 0x2a0   : > { %2157 = vst.msk [vmem:[%s3659_s30 + $0xa0] sm:$0xff] %vm339_vm1, %v2125_v44  ;;  %v2126_v18 = vadd.f32 %v3652_v59, %v2055_v14 }
 0x2a1   : > { %2160 = vst.msk [vmem:[%s3659_s30 + $0xb8] sm:$0xff] %vm339_vm1, %v2128_v57 }
 0x2a2   : > { %2158 = vst.msk [vmem:[%s3659_s30 + $0xa8] sm:$0xff] %vm339_vm1, %v2126_v18 }
 0x2b1   : > { %v2373_v60 = vpop.f32.mrb[24].mxu1 }
 0x2b2   : > { %v2131_v24 = vadd.f32 %v2373_v60, %v3652_v59  ;;  %v2068_v4 = vpop.f32.mrb[25].mxu1 }
 0x2b3   : > { %v2129_v28 = vadd.f32 %v3652_v59, %v2068_v4  ;;  %v2374_v5 = vpop.f32.mrb[26].mxu1 }
 0x2b4   : > { %2163 = vst.msk [vmem:[%s3659_s30 + $0xd0] sm:$0xff] %vm339_vm1, %v2131_v24  ;;  %v2132_v41 = vadd.f32 %v2374_v5, %v3652_v59  ;;  %v2071_v13 = vpop.f32.mrb[27].mxu1 }
 0x2b5   : > { %2161 = vst.msk [vmem:[%s3659_s30 + $0xc0] sm:$0xff] %vm339_vm1, %v2129_v28  ;;  %v2130_v45 = vadd.f32 %v3652_v59, %v2071_v13 }
 0x2b6   : > { %2164 = vst.msk [vmem:[%s3659_s30 + $0xd8] sm:$0xff] %vm339_vm1, %v2132_v41 }
 0x2b7   : > { %2162 = vst.msk [vmem:[%s3659_s30 + $0xc8] sm:$0xff] %vm339_vm1, %v2130_v45 }
 0x2c7   : > { %v2377_v23 = vpop.f32.mrb[28].mxu1 }
 0x2c8   : > { %v2135_v31 = vadd.f32 %v2377_v23, %v3652_v59  ;;  %v2084_v0 = vpop.f32.mrb[29].mxu1 }
 0x2c9   : > { %v2133_v7 = vadd.f32 %v3652_v59, %v2084_v0  ;;  %v2378_v36 = vpop.f32.mrb[30].mxu1 }
 0x2ca   : > { %2167 = vst.msk [vmem:[%s3659_s30 + $0xf0] sm:$0xff] %vm339_vm1, %v2135_v31  ;;  %v2136_v2 = vadd.f32 %v2378_v36, %v3652_v59  ;;  %v2087_v51 = vpop.f32.mrb[31].mxu1 }
 0x2cb   : > { %2165 = vst.msk [vmem:[%s3659_s30 + $0xe0] sm:$0xff] %vm339_vm1, %v2133_v7  ;;  %v2134_v20 = vadd.f32 %v3652_v59, %v2087_v51 }
 0x2cc   : > { %2168 = vst.msk [vmem:[%s3659_s30 + $0xf8] sm:$0xff] %vm339_vm1, %v2136_v2 }
 0x2cd   : > { %2166 = vst.msk [vmem:[%s3659_s30 + $0xe8] sm:$0xff] %vm339_vm1, %v2134_v20 }
 0x2ce PF: > { %s17_s24 = sadd.s32 1, %s2474_s24  }
 0x2cf   : > { %p14_p4 = scmp.ge.s32.totalorder %s17_s24, 4  }
 0x2d1   :  { %16 = sbr.rel (!%p14_p4) target bundleno = 1 (0x1), region = 81 }

</bundles_post_ra>
